<compile_context>
chip_gen: v7x
topology: tpu7x:2x2x1
jax: 0.10.0
libtpu: 0.0.40
codegen_flags: <defaults>
</compile_context>

<pallas_src>
import functools

import jax
import jax.numpy as jnp
from jax.experimental import pallas as pl
from jax.experimental.pallas import tpu as pltpu

EPS = 1e-5
NEG_INF = -1e30  # numerically equivalent to float('-inf') after softmax


# ----------------------------- Pallas kernel -----------------------------

def _layernorm(y, g, b):
    """LayerNorm over the last dim. y: (M, E) f32, g/b: (1, E)."""
    mean = jnp.mean(y, axis=-1, keepdims=True)
    yc = y - mean
    var = jnp.mean(yc * yc, axis=-1, keepdims=True)
    inv = jax.lax.rsqrt(var + EPS)
    return yc * inv * g + b


def _encoder_stack_kernel(*refs, nhead, apply_final_norm, has_attn_mask, has_kpm,
                          matmul_dtype):
    """One (batch_block, layer) grid step of the fused encoder stack.

    Grid: (N//Nb, num_layers).  The running activation for the current batch block is
    carried across layer steps in x_scratch (VMEM, f32).  Output is written only at
    the last layer step (accumulator pattern on the 'arbitrary' layer axis).
    """
    it = iter(refs)
    src_ref = next(it)
    attn_mask_ref = next(it) if has_attn_mask else None
    kpm_ref = next(it) if has_kpm else None
    w_qkv_ref = next(it)
    w_o_ref = next(it)
    w1_ref = next(it)
    w2_ref = next(it)
    vec_ref = next(it)
    norm_ref = next(it) if apply_final_norm else None
    out_ref = next(it)
    x_scratch = next(it)
    ctx_scratch = next(it)

    layer = pl.program_id(1)
    n_layers = pl.num_programs(1)

    Nb, L, E = x_scratch.shape
    F = w1_ref.shape[-1]
    Dh = E // nhead

    @pl.when(layer == 0)
    def _():
        x_scratch[...] = src_ref[...].astype(jnp.float32)

    # per-layer biases / LayerNorm vectors: one slab DMA, sliced here (f32)
    vec = vec_ref[...]                         # (8, W)
    b_qkv = vec[0:1, :3 * E]
    b_o   = vec[1:2, :E]
    ln1_g = vec[2:3, :E]
    ln1_b = vec[3:4, :E]
    b1    = vec[4:5, :F]
    b2    = vec[5:6, :E]
    ln2_g = vec[6:7, :E]
    ln2_b = vec[7:8, :E]

    def mm(a, w):
        # weights already stored in matmul_dtype; accumulate in f32 on the MXU
        return jnp.dot(a.astype(matmul_dtype), w, preferred_element_type=jnp.float32)

    x = x_scratch[...]                         # (Nb, L, E) f32
    x2d = x.reshape(Nb * L, E)

    # --- fused QKV projection (1/sqrt(Dh) pre-folded into Q weights) ---
    qkv = mm(x2d, w_qkv_ref[...]) + b_qkv      # (Nb*L, 3E) f32
    qkv = qkv.reshape(Nb, L, 3 * E)
    q = qkv[:, :, :E]
    k = qkv[:, :, E:2 * E]
    v = qkv[:, :, 2 * E:]

    # additive mask, built from small blocks; statically elided when absent
    if has_attn_mask and has_kpm:
        mask = attn_mask_ref[...][None, :, :] + kpm_ref[...]     # (Nb, L, L)
    elif has_attn_mask:
        mask = attn_mask_ref[...][None, :, :]                    # (1, L, L)
    elif has_kpm:
        mask = kpm_ref[...]                                      # (Nb, 1, L)
    else:
        mask = None

    # --- multi-head self-attention, batched over the Nb block ---
    # Each head's context goes into its (L, Dh) lane slab of ctx_scratch (no concat).
    # TODO(synk): flash-style Lk tiling (online softmax) for long sequences on v7x.
    for h in range(nhead):
        sl = slice(h * Dh, (h + 1) * Dh)
        qh = q[:, :, sl].astype(matmul_dtype)
        kh = k[:, :, sl].astype(matmul_dtype)
        vh = v[:, :, sl].astype(matmul_dtype)
        s = jnp.einsum('bqd,bkd->bqk', qh, kh,
                       preferred_element_type=jnp.float32)       # (Nb, L, L) f32
        if mask is not None:
            s = s + mask
        s = s - jnp.max(s, axis=-1, keepdims=True)
        p = jnp.exp(s)
        p = p * pl.reciprocal(jnp.sum(p, axis=-1, keepdims=True), approx=True)
        ctx_scratch[:, :, sl] = jnp.einsum('bqk,bkd->bqd',
                                           p.astype(matmul_dtype), vh,
                                           preferred_element_type=jnp.float32)

    # output projection + residual + LayerNorm (fused epilogue)
    ctx2d = ctx_scratch[...].reshape(Nb * L, E)
    attn_out = mm(ctx2d, w_o_ref[...]) + b_o
    x1 = _layernorm(x2d + attn_out, ln1_g, ln1_b)

    # --- feed-forward + residual + LayerNorm ---
    # TODO(synk): F-chunked FFN weight tiling for v7x's 64 MiB VMEM at big E/F.
    h1 = jnp.maximum(mm(x1, w1_ref[...]) + b1, 0.0)
    h2 = mm(h1, w2_ref[...]) + b2
    x2 = _layernorm(x1 + h2, ln2_g, ln2_b)

    x_scratch[...] = x2.reshape(Nb, L, E)

    @pl.when(layer == n_layers - 1)
    def _():
        if apply_final_norm:
            y = _layernorm(x2, norm_ref[0:1, :], norm_ref[1:2, :])
        else:
            y = x2
        out_ref[...] = y.reshape(Nb, L, E).astype(out_ref.dtype)


# ----------------------------- wrapper -----------------------------

def _vmem_limit_bytes():
    try:
        cap = int(pltpu.get_tpu_info().vmem_capacity_bytes)
        return min(int(cap * 0.85), 100 * 1024 * 1024)
    except Exception:
        return None   # fall back to the compiler default


def _choose_nb(n, cap=8):
    """Largest divisor of n that is <= cap (batch rows per grid step)."""
    nb = min(n, cap)
    while n % nb:
        nb -= 1
    return nb


def _additive_attn_mask(mask):
    if mask.dtype == jnp.bool_:
        return jnp.where(mask, NEG_INF, 0.0).astype(jnp.float32)
    return mask.astype(jnp.float32)


def _additive_key_padding_mask(kpm, N, L):
    if kpm.dtype == jnp.bool_:
        kpm = jnp.where(kpm, NEG_INF, 0.0)
    return kpm.astype(jnp.float32).reshape(N, 1, L)


def transformer_encoder_fwd(prep, src, mask=None, src_key_padding_mask=None):
    """src: [src_len, batch, d_model] (PyTorch nn.TransformerEncoder convention)."""
    L, N, E = src.shape
    nhead = prep["nhead"]
    F = prep["w1"].shape[-1]
    W = prep["vec"].shape[-1]
    matmul_dtype = prep["w_qkv"].dtype
    apply_final_norm = prep["norm"] is not None
    has_attn_mask = mask is not None
    has_kpm = src_key_padding_mask is not None

    Nb = _choose_nb(N)

    # single HBM transpose for the whole stack: [L, N, E] -> [N, L, E]
    src_nle = jnp.transpose(src, (1, 0, 2))

    per_batch = lambda n, l: (n, 0, 0)
    per_layer = lambda n, l: (l, 0, 0)
    shared2 = lambda n, l: (0, 0)

    inputs = [src_nle]
    in_specs = [pl.BlockSpec((Nb, L, E), per_batch)]
    if has_attn_mask:
        inputs.append(_additive_attn_mask(mask))
        in_specs.append(pl.BlockSpec((L, L), shared2))
    if has_kpm:
        inputs.append(_additive_key_padding_mask(src_key_padding_mask, N, L))
        in_specs.append(pl.BlockSpec((Nb, 1, L), per_batch))
    inputs += [prep["w_qkv"], prep["w_o"], prep["w1"], prep["w2"], prep["vec"]]
    in_specs += [
        pl.BlockSpec((None, E, 3 * E), per_layer),   # w_qkv (matmul_dtype)
        pl.BlockSpec((None, E, E), per_layer),       # w_o
        pl.BlockSpec((None, E, F), per_layer),       # w1
        pl.BlockSpec((None, F, E), per_layer),       # w2
        pl.BlockSpec((None, 8, W), per_layer),       # packed bias/LN slab (f32)
    ]
    if apply_final_norm:
        inputs.append(prep["norm"])
        in_specs.append(pl.BlockSpec((2, E), shared2))

    kernel = functools.partial(
        _encoder_stack_kernel,
        nhead=nhead,
        apply_final_norm=apply_final_norm,
        has_attn_mask=has_attn_mask,
        has_kpm=has_kpm,
        matmul_dtype=matmul_dtype,
    )

    out = pl.pallas_call(
        kernel,
        out_shape=jax.ShapeDtypeStruct((N, L, E), src.dtype),
        grid=(N // Nb, prep["w_qkv"].shape[0]),
        in_specs=in_specs,
        out_specs=pl.BlockSpec((Nb, L, E), per_batch),
        scratch_shapes=[pltpu.VMEM((Nb, L, E), jnp.float32),   # running activation
                        pltpu.VMEM((Nb, L, E), jnp.float32)],  # per-head context slab
        compiler_params=pltpu.CompilerParams(
            dimension_semantics=("parallel", "arbitrary"),
            vmem_limit_bytes=_vmem_limit_bytes()),
    )(*inputs)

    return jnp.transpose(out, (1, 0, 2))   # back to [L, N, E]


# ----------------------------- parameters -----------------------------

def _xavier(key, shape):
    fan_in, fan_out = shape[-2], shape[-1]
    a = (6.0 / (fan_in + fan_out)) ** 0.5
    return jax.random.uniform(key, shape, jnp.float32, -a, a)


def init_encoder(key, d_model, nhead, num_layers, dim_ff, with_final_norm=True):
    E, F, Ln = d_model, dim_ff, num_layers
    w_qkv, w_o, w1, w2 = [], [], [], []
    for _ in range(Ln):
        k0, k1, k2, k3, key = jax.random.split(key, 5)
        w_qkv.append(_xavier(k0, (E, 3 * E)))
        w_o.append(_xavier(k1, (E, E)))
        w1.append(_xavier(k2, (E, F)))
        w2.append(_xavier(k3, (F, E)))
    return dict(
        nhead=nhead, with_final_norm=with_final_norm,
        w_qkv=jnp.stack(w_qkv), b_qkv=jnp.zeros((Ln, 3 * E), jnp.float32),
        w_o=jnp.stack(w_o),     b_o=jnp.zeros((Ln, E), jnp.float32),
        ln1_g=jnp.ones((Ln, E), jnp.float32), ln1_b=jnp.zeros((Ln, E), jnp.float32),
        w1=jnp.stack(w1), b1=jnp.zeros((Ln, F), jnp.float32),
        w2=jnp.stack(w2), b2=jnp.zeros((Ln, E), jnp.float32),
        ln2_g=jnp.ones((Ln, E), jnp.float32), ln2_b=jnp.zeros((Ln, E), jnp.float32),
        norm_g=jnp.ones((E,), jnp.float32), norm_b=jnp.zeros((E,), jnp.float32),
    )


def prepare_params(params, matmul_dtype=jnp.bfloat16):
    """One-time host-side transform:
       * fold 1/sqrt(Dh) into the Q columns of w_qkv / b_qkv,
       * cast the large matmul weights to matmul_dtype (bf16 storage in HBM),
       * pack the 8 small per-layer vectors into one (Ln, 8, W) f32 slab,
       * stack the optional final-LayerNorm params into a (2, E) f32 block.
    """
    Ln, E, _ = params["w_qkv"].shape
    F = params["w1"].shape[-1]
    Dh = E // params["nhead"]
    scale = 1.0 / float(Dh) ** 0.5

    w_qkv = params["w_qkv"].at[:, :, :E].multiply(scale)
    b_qkv = params["b_qkv"].at[:, :E].multiply(scale)

    W = max(3 * E, F)

    def row(v):
        return jnp.pad(v, ((0, 0), (0, W - v.shape[-1])))[:, None, :]

    vec = jnp.concatenate([
        row(b_qkv), row(params["b_o"]),
        row(params["ln1_g"]), row(params["ln1_b"]),
        row(params["b1"]), row(params["b2"]),
        row(params["ln2_g"]), row(params["ln2_b"]),
    ], axis=1).astype(jnp.float32)                         # (Ln, 8, W)

    norm = None
    if params["with_final_norm"]:
        norm = jnp.stack([params["norm_g"], params["norm_b"]]).astype(jnp.float32)

    return dict(
        nhead=params["nhead"],
        w_qkv=w_qkv.astype(matmul_dtype),
        w_o=params["w_o"].astype(matmul_dtype),
        w1=params["w1"].astype(matmul_dtype),
        w2=params["w2"].astype(matmul_dtype),
        vec=vec,
        norm=norm,
    )


# ----------------------------- main -----------------------------

if __name__ == "__main__":
    d_model = 32
    nhead = 4
    num_layers = 2
    dim_feedforward = 64
    src_len, batch = 8, 2

    root = jax.random.PRNGKey(0)
    k_param, k_src = jax.random.split(root)

    params = init_encoder(k_param, d_model, nhead, num_layers, dim_feedforward,
                          with_final_norm=True)
    prep = prepare_params(params, matmul_dtype=jnp.bfloat16)

    src = jax.random.normal(k_src, (src_len, batch, d_model), jnp.float32)
    # mask the last key position of the second batch element
    src_key_padding_mask = jnp.zeros((batch, src_len), jnp.bool_).at[1, -1].set(True)

    out = transformer_encoder_fwd(prep, src, mask=None,
                                  src_key_padding_mask=src_key_padding_mask)
    out = jax.block_until_ready(out)

    assert out.shape == (src_len, batch, d_model)
    assert bool(jnp.all(jnp.isfinite(out)))
    print("KERNEL_OK")
</pallas_src>

<mosaic_0001>
module attributes {stable_mosaic.version = 11 : i64} {
  func.func @_encoder_stack_kernel(%arg0: i32, %arg1: i32, %arg2: memref<2x8x32xf32, #tpu.memory_space<vmem>>, %arg3: memref<2x1x8xf32, #tpu.memory_space<vmem>>, %arg4: memref<1x32x96xbf16, #tpu.memory_space<vmem>>, %arg5: memref<1x32x32xbf16, #tpu.memory_space<vmem>>, %arg6: memref<1x32x64xbf16, #tpu.memory_space<vmem>>, %arg7: memref<1x64x32xbf16, #tpu.memory_space<vmem>>, %arg8: memref<1x8x96xf32, #tpu.memory_space<vmem>>, %arg9: memref<2x32xf32, #tpu.memory_space<vmem>>, %arg10: memref<2x8x32xf32, #tpu.memory_space<vmem>>, %arg11: memref<2x8x32xf32, #tpu.memory_space<vmem>>, %arg12: memref<2x8x32xf32, #tpu.memory_space<vmem>>) attributes {dimension_semantics = [#tpu.dimension_semantics<parallel>, #tpu.dimension_semantics<arbitrary>], iteration_bounds = array<i64: 1, 2>, scalar_prefetch = 0 : i64, scratch_operands = 2 : i64, tpu.core_type = #tpu.core_type<tc>, window_params = [{transform_indices = @transform_0, window_bounds = array<i64: 2, 8, 32>}, {transform_indices = @transform_1, window_bounds = array<i64: 2, 1, 8>}, {transform_indices = @transform_2, window_bounds = array<i64: 1, 32, 96>}, {transform_indices = @transform_3, window_bounds = array<i64: 1, 32, 32>}, {transform_indices = @transform_4, window_bounds = array<i64: 1, 32, 64>}, {transform_indices = @transform_5, window_bounds = array<i64: 1, 64, 32>}, {transform_indices = @transform_6, window_bounds = array<i64: 1, 8, 96>}, {pipeline_mode = #tpu.pipeline_mode<synchronous>, transform_indices = @transform_7, window_bounds = array<i64: 2, 32>}, {transform_indices = @transform_8, window_bounds = array<i64: 2, 8, 32>}]} {
    %c0_i32 = arith.constant 0 : i32
    %0 = arith.cmpi eq, %arg1, %c0_i32 : i32
    %1 = arith.extui %0 : i1 to i32
    %c0_i32_0 = arith.constant 0 : i32
    %2 = arith.cmpi ne, %1, %c0_i32_0 : i32
    scf.if %2 {
      %c0_67 = arith.constant 0 : index
      %c0_68 = arith.constant 0 : index
      %c0_69 = arith.constant 0 : index
      %183 = vector.load %arg2[%c0_67, %c0_68, %c0_69] : memref<2x8x32xf32, #tpu.memory_space<vmem>>, vector<2x8x32xf32>
      %c0_70 = arith.constant 0 : index
      %c0_71 = arith.constant 0 : index
      %c0_72 = arith.constant 0 : index
      %184 = vector.load %arg11[%c0_70, %c0_71, %c0_72] : memref<2x8x32xf32, #tpu.memory_space<vmem>>, vector<2x8x32xf32>
      tpu.vector_store %arg11[%c0_70, %c0_71, %c0_72], %183 {strides = array<i32>} : memref<2x8x32xf32, #tpu.memory_space<vmem>>, vector<2x8x32xf32>,
    } else {
    }
    %c0 = arith.constant 0 : index
    %c0_1 = arith.constant 0 : index
    %c0_2 = arith.constant 0 : index
    %3 = vector.load %arg8[%c0, %c0_1, %c0_2] : memref<1x8x96xf32, #tpu.memory_space<vmem>>, vector<1x8x96xf32>
    %4 = vector.shape_cast %3 : vector<1x8x96xf32> to vector<8x96xf32>
    %5 = vector.extract_strided_slice %4 {offsets = [0, 0], sizes = [1, 96], strides = [1, 1]} : vector<8x96xf32> to vector<1x96xf32>
    %6 = vector.extract_strided_slice %4 {offsets = [1, 0], sizes = [1, 32], strides = [1, 1]} : vector<8x96xf32> to vector<1x32xf32>
    %7 = vector.extract_strided_slice %4 {offsets = [2, 0], sizes = [1, 32], strides = [1, 1]} : vector<8x96xf32> to vector<1x32xf32>
    %8 = vector.extract_strided_slice %4 {offsets = [3, 0], sizes = [1, 32], strides = [1, 1]} : vector<8x96xf32> to vector<1x32xf32>
    %9 = vector.extract_strided_slice %4 {offsets = [4, 0], sizes = [1, 64], strides = [1, 1]} : vector<8x96xf32> to vector<1x64xf32>
    %10 = vector.extract_strided_slice %4 {offsets = [5, 0], sizes = [1, 32], strides = [1, 1]} : vector<8x96xf32> to vector<1x32xf32>
    %11 = vector.extract_strided_slice %4 {offsets = [6, 0], sizes = [1, 32], strides = [1, 1]} : vector<8x96xf32> to vector<1x32xf32>
    %12 = vector.extract_strided_slice %4 {offsets = [7, 0], sizes = [1, 32], strides = [1, 1]} : vector<8x96xf32> to vector<1x32xf32>
    %c0_3 = arith.constant 0 : index
    %c0_4 = arith.constant 0 : index
    %c0_5 = arith.constant 0 : index
    %13 = vector.load %arg11[%c0_3, %c0_4, %c0_5] : memref<2x8x32xf32, #tpu.memory_space<vmem>>, vector<2x8x32xf32>
    %14 = vector.shape_cast %13 : vector<2x8x32xf32> to vector<16x32xf32>
    %c0_6 = arith.constant 0 : index
    %c0_7 = arith.constant 0 : index
    %c0_8 = arith.constant 0 : index
    %15 = vector.load %arg4[%c0_6, %c0_7, %c0_8] : memref<1x32x96xbf16, #tpu.memory_space<vmem>>, vector<1x32x96xbf16>
    %16 = vector.shape_cast %15 : vector<1x32x96xbf16> to vector<32x96xbf16>
    %17 = arith.truncf %14 : vector<16x32xf32> to vector<16x32xbf16>
    %cst = arith.constant dense<0.000000e+00> : vector<16x96xf32>
    %18 = tpu.matmul %17, %16, %cst {dimension_numbers = #tpu.dot_dimension_numbers<[1], [0], [0], [1], [0, 0, 1, 1], [], []>} : vector<16x32xbf16>, vector<32x96xbf16>, vector<16x96xf32> -> vector<16x96xf32>
    %19 = vector.broadcast %5 : vector<1x96xf32> to vector<16x96xf32>
    %20 = arith.addf %18, %19 : vector<16x96xf32>
    %21 = vector.shape_cast %20 : vector<16x96xf32> to vector<2x8x96xf32>
    %22 = vector.extract_strided_slice %21 {offsets = [0, 0, 0], sizes = [2, 8, 32], strides = [1, 1, 1]} : vector<2x8x96xf32> to vector<2x8x32xf32>
    %23 = vector.extract_strided_slice %21 {offsets = [0, 0, 32], sizes = [2, 8, 32], strides = [1, 1, 1]} : vector<2x8x96xf32> to vector<2x8x32xf32>
    %24 = vector.extract_strided_slice %21 {offsets = [0, 0, 64], sizes = [2, 8, 32], strides = [1, 1, 1]} : vector<2x8x96xf32> to vector<2x8x32xf32>
    %c0_9 = arith.constant 0 : index
    %c0_10 = arith.constant 0 : index
    %c0_11 = arith.constant 0 : index
    %25 = vector.load %arg3[%c0_9, %c0_10, %c0_11] : memref<2x1x8xf32, #tpu.memory_space<vmem>>, vector<2x1x8xf32>
    %26 = vector.extract_strided_slice %22 {offsets = [0, 0, 0], sizes = [2, 8, 8], strides = [1, 1, 1]} : vector<2x8x32xf32> to vector<2x8x8xf32>
    %27 = arith.truncf %26 : vector<2x8x8xf32> to vector<2x8x8xbf16>
    %28 = vector.extract_strided_slice %23 {offsets = [0, 0, 0], sizes = [2, 8, 8], strides = [1, 1, 1]} : vector<2x8x32xf32> to vector<2x8x8xf32>
    %29 = arith.truncf %28 : vector<2x8x8xf32> to vector<2x8x8xbf16>
    %30 = vector.extract_strided_slice %24 {offsets = [0, 0, 0], sizes = [2, 8, 8], strides = [1, 1, 1]} : vector<2x8x32xf32> to vector<2x8x8xf32>
    %31 = arith.truncf %30 : vector<2x8x8xf32> to vector<2x8x8xbf16>
    "tpu.trace_start"() <{level = 10 : i32, message = "bqd,bkd->bqk"}> : () -> ()
    %cst_12 = arith.constant dense<0.000000e+00> : vector<2x8x8xf32>
    %32 = tpu.matmul %27, %29, %cst_12 {dimension_numbers = #tpu.dot_dimension_numbers<[2], [2], [1], [1], [0, 0, 0, 1, 1, 1], [0], [0]>} : vector<2x8x8xbf16>, vector<2x8x8xbf16>, vector<2x8x8xf32> -> vector<2x8x8xf32>
    "tpu.trace_stop"() : () -> ()
    %33 = vector.broadcast %25 : vector<2x1x8xf32> to vector<2x8x8xf32>
    %34 = arith.addf %32, %33 : vector<2x8x8xf32>
    %cst_13 = arith.constant dense<0xFF800000> : vector<2x8xf32>
    %35 = vector.multi_reduction <maximumf>, %34, %cst_13 [2] : vector<2x8x8xf32> to vector<2x8xf32>
    %36 = vector.shape_cast %35 : vector<2x8xf32> to vector<2x8x1xf32>
    %37 = vector.broadcast %36 : vector<2x8x1xf32> to vector<2x8x8xf32>
    %38 = arith.subf %34, %37 : vector<2x8x8xf32>
    %39 = math.exp %38 : vector<2x8x8xf32>
    %cst_14 = arith.constant dense<0.000000e+00> : vector<2x8xf32>
    %40 = vector.multi_reduction <add>, %39, %cst_14 [2] : vector<2x8x8xf32> to vector<2x8xf32>
    %41 = vector.shape_cast %40 : vector<2x8xf32> to vector<2x8x1xf32>
    %42 = tpu.reciprocal %41 {approx = true} : vector<2x8x1xf32> -> vector<2x8x1xf32>
    %43 = vector.broadcast %42 : vector<2x8x1xf32> to vector<2x8x8xf32>
    %44 = arith.mulf %39, %43 : vector<2x8x8xf32>
    %45 = arith.truncf %44 : vector<2x8x8xf32> to vector<2x8x8xbf16>
    "tpu.trace_start"() <{level = 10 : i32, message = "bqk,bkd->bqd"}> : () -> ()
    %cst_15 = arith.constant dense<0.000000e+00> : vector<2x8x8xf32>
    %46 = tpu.matmul %45, %31, %cst_15 {dimension_numbers = #tpu.dot_dimension_numbers<[2], [1], [1], [2], [0, 0, 0, 1, 1, 2], [0], [0]>} : vector<2x8x8xbf16>, vector<2x8x8xbf16>, vector<2x8x8xf32> -> vector<2x8x8xf32>
    "tpu.trace_stop"() : () -> ()
    %c0_16 = arith.constant 0 : index
    %c0_17 = arith.constant 0 : index
    %c0_18 = arith.constant 0 : index
    %47 = vector.load %arg12[%c0_16, %c0_17, %c0_18] : memref<2x8x32xf32, #tpu.memory_space<vmem>>, vector<2x8x8xf32>
    tpu.vector_store %arg12[%c0_16, %c0_17, %c0_18], %46 {strides = array<i32>} : memref<2x8x32xf32, #tpu.memory_space<vmem>>, vector<2x8x8xf32>,
    %48 = vector.extract_strided_slice %22 {offsets = [0, 0, 8], sizes = [2, 8, 8], strides = [1, 1, 1]} : vector<2x8x32xf32> to vector<2x8x8xf32>
    %49 = arith.truncf %48 : vector<2x8x8xf32> to vector<2x8x8xbf16>
    %50 = vector.extract_strided_slice %23 {offsets = [0, 0, 8], sizes = [2, 8, 8], strides = [1, 1, 1]} : vector<2x8x32xf32> to vector<2x8x8xf32>
    %51 = arith.truncf %50 : vector<2x8x8xf32> to vector<2x8x8xbf16>
    %52 = vector.extract_strided_slice %24 {offsets = [0, 0, 8], sizes = [2, 8, 8], strides = [1, 1, 1]} : vector<2x8x32xf32> to vector<2x8x8xf32>
    %53 = arith.truncf %52 : vector<2x8x8xf32> to vector<2x8x8xbf16>
    "tpu.trace_start"() <{level = 10 : i32, message = "bqd,bkd->bqk"}> : () -> ()
    %cst_19 = arith.constant dense<0.000000e+00> : vector<2x8x8xf32>
    %54 = tpu.matmul %49, %51, %cst_19 {dimension_numbers = #tpu.dot_dimension_numbers<[2], [2], [1], [1], [0, 0, 0, 1, 1, 1], [0], [0]>} : vector<2x8x8xbf16>, vector<2x8x8xbf16>, vector<2x8x8xf32> -> vector<2x8x8xf32>
    "tpu.trace_stop"() : () -> ()
    %55 = vector.broadcast %25 : vector<2x1x8xf32> to vector<2x8x8xf32>
    %56 = arith.addf %54, %55 : vector<2x8x8xf32>
    %cst_20 = arith.constant dense<0xFF800000> : vector<2x8xf32>
    %57 = vector.multi_reduction <maximumf>, %56, %cst_20 [2] : vector<2x8x8xf32> to vector<2x8xf32>
    %58 = vector.shape_cast %57 : vector<2x8xf32> to vector<2x8x1xf32>
    %59 = vector.broadcast %58 : vector<2x8x1xf32> to vector<2x8x8xf32>
    %60 = arith.subf %56, %59 : vector<2x8x8xf32>
    %61 = math.exp %60 : vector<2x8x8xf32>
    %cst_21 = arith.constant dense<0.000000e+00> : vector<2x8xf32>
    %62 = vector.multi_reduction <add>, %61, %cst_21 [2] : vector<2x8x8xf32> to vector<2x8xf32>
    %63 = vector.shape_cast %62 : vector<2x8xf32> to vector<2x8x1xf32>
    %64 = tpu.reciprocal %63 {approx = true} : vector<2x8x1xf32> -> vector<2x8x1xf32>
    %65 = vector.broadcast %64 : vector<2x8x1xf32> to vector<2x8x8xf32>
    %66 = arith.mulf %61, %65 : vector<2x8x8xf32>
    %67 = arith.truncf %66 : vector<2x8x8xf32> to vector<2x8x8xbf16>
    "tpu.trace_start"() <{level = 10 : i32, message = "bqk,bkd->bqd"}> : () -> ()
    %cst_22 = arith.constant dense<0.000000e+00> : vector<2x8x8xf32>
    %68 = tpu.matmul %67, %53, %cst_22 {dimension_numbers = #tpu.dot_dimension_numbers<[2], [1], [1], [2], [0, 0, 0, 1, 1, 2], [0], [0]>} : vector<2x8x8xbf16>, vector<2x8x8xbf16>, vector<2x8x8xf32> -> vector<2x8x8xf32>
    "tpu.trace_stop"() : () -> ()
    %c0_23 = arith.constant 0 : index
    %c0_24 = arith.constant 0 : index
    %c8 = arith.constant 8 : index
    %69 = vector.load %arg12[%c0_23, %c0_24, %c8] : memref<2x8x32xf32, #tpu.memory_space<vmem>>, vector<2x8x8xf32>
    tpu.vector_store %arg12[%c0_23, %c0_24, %c8], %68 {strides = array<i32>} : memref<2x8x32xf32, #tpu.memory_space<vmem>>, vector<2x8x8xf32>,
    %70 = vector.extract_strided_slice %22 {offsets = [0, 0, 16], sizes = [2, 8, 8], strides = [1, 1, 1]} : vector<2x8x32xf32> to vector<2x8x8xf32>
    %71 = arith.truncf %70 : vector<2x8x8xf32> to vector<2x8x8xbf16>
    %72 = vector.extract_strided_slice %23 {offsets = [0, 0, 16], sizes = [2, 8, 8], strides = [1, 1, 1]} : vector<2x8x32xf32> to vector<2x8x8xf32>
    %73 = arith.truncf %72 : vector<2x8x8xf32> to vector<2x8x8xbf16>
    %74 = vector.extract_strided_slice %24 {offsets = [0, 0, 16], sizes = [2, 8, 8], strides = [1, 1, 1]} : vector<2x8x32xf32> to vector<2x8x8xf32>
    %75 = arith.truncf %74 : vector<2x8x8xf32> to vector<2x8x8xbf16>
    "tpu.trace_start"() <{level = 10 : i32, message = "bqd,bkd->bqk"}> : () -> ()
    %cst_25 = arith.constant dense<0.000000e+00> : vector<2x8x8xf32>
    %76 = tpu.matmul %71, %73, %cst_25 {dimension_numbers = #tpu.dot_dimension_numbers<[2], [2], [1], [1], [0, 0, 0, 1, 1, 1], [0], [0]>} : vector<2x8x8xbf16>, vector<2x8x8xbf16>, vector<2x8x8xf32> -> vector<2x8x8xf32>
    "tpu.trace_stop"() : () -> ()
    %77 = vector.broadcast %25 : vector<2x1x8xf32> to vector<2x8x8xf32>
    %78 = arith.addf %76, %77 : vector<2x8x8xf32>
    %cst_26 = arith.constant dense<0xFF800000> : vector<2x8xf32>
    %79 = vector.multi_reduction <maximumf>, %78, %cst_26 [2] : vector<2x8x8xf32> to vector<2x8xf32>
    %80 = vector.shape_cast %79 : vector<2x8xf32> to vector<2x8x1xf32>
    %81 = vector.broadcast %80 : vector<2x8x1xf32> to vector<2x8x8xf32>
    %82 = arith.subf %78, %81 : vector<2x8x8xf32>
    %83 = math.exp %82 : vector<2x8x8xf32>
    %cst_27 = arith.constant dense<0.000000e+00> : vector<2x8xf32>
    %84 = vector.multi_reduction <add>, %83, %cst_27 [2] : vector<2x8x8xf32> to vector<2x8xf32>
    %85 = vector.shape_cast %84 : vector<2x8xf32> to vector<2x8x1xf32>
    %86 = tpu.reciprocal %85 {approx = true} : vector<2x8x1xf32> -> vector<2x8x1xf32>
    %87 = vector.broadcast %86 : vector<2x8x1xf32> to vector<2x8x8xf32>
    %88 = arith.mulf %83, %87 : vector<2x8x8xf32>
    %89 = arith.truncf %88 : vector<2x8x8xf32> to vector<2x8x8xbf16>
    "tpu.trace_start"() <{level = 10 : i32, message = "bqk,bkd->bqd"}> : () -> ()
    %cst_28 = arith.constant dense<0.000000e+00> : vector<2x8x8xf32>
    %90 = tpu.matmul %89, %75, %cst_28 {dimension_numbers = #tpu.dot_dimension_numbers<[2], [1], [1], [2], [0, 0, 0, 1, 1, 2], [0], [0]>} : vector<2x8x8xbf16>, vector<2x8x8xbf16>, vector<2x8x8xf32> -> vector<2x8x8xf32>
    "tpu.trace_stop"() : () -> ()
    %c0_29 = arith.constant 0 : index
    %c0_30 = arith.constant 0 : index
    %c16 = arith.constant 16 : index
    %91 = vector.load %arg12[%c0_29, %c0_30, %c16] : memref<2x8x32xf32, #tpu.memory_space<vmem>>, vector<2x8x8xf32>
    tpu.vector_store %arg12[%c0_29, %c0_30, %c16], %90 {strides = array<i32>} : memref<2x8x32xf32, #tpu.memory_space<vmem>>, vector<2x8x8xf32>,
    %92 = vector.extract_strided_slice %22 {offsets = [0, 0, 24], sizes = [2, 8, 8], strides = [1, 1, 1]} : vector<2x8x32xf32> to vector<2x8x8xf32>
    %93 = arith.truncf %92 : vector<2x8x8xf32> to vector<2x8x8xbf16>
    %94 = vector.extract_strided_slice %23 {offsets = [0, 0, 24], sizes = [2, 8, 8], strides = [1, 1, 1]} : vector<2x8x32xf32> to vector<2x8x8xf32>
    %95 = arith.truncf %94 : vector<2x8x8xf32> to vector<2x8x8xbf16>
    %96 = vector.extract_strided_slice %24 {offsets = [0, 0, 24], sizes = [2, 8, 8], strides = [1, 1, 1]} : vector<2x8x32xf32> to vector<2x8x8xf32>
    %97 = arith.truncf %96 : vector<2x8x8xf32> to vector<2x8x8xbf16>
    "tpu.trace_start"() <{level = 10 : i32, message = "bqd,bkd->bqk"}> : () -> ()
    %cst_31 = arith.constant dense<0.000000e+00> : vector<2x8x8xf32>
    %98 = tpu.matmul %93, %95, %cst_31 {dimension_numbers = #tpu.dot_dimension_numbers<[2], [2], [1], [1], [0, 0, 0, 1, 1, 1], [0], [0]>} : vector<2x8x8xbf16>, vector<2x8x8xbf16>, vector<2x8x8xf32> -> vector<2x8x8xf32>
    "tpu.trace_stop"() : () -> ()
    %99 = vector.broadcast %25 : vector<2x1x8xf32> to vector<2x8x8xf32>
    %100 = arith.addf %98, %99 : vector<2x8x8xf32>
    %cst_32 = arith.constant dense<0xFF800000> : vector<2x8xf32>
    %101 = vector.multi_reduction <maximumf>, %100, %cst_32 [2] : vector<2x8x8xf32> to vector<2x8xf32>
    %102 = vector.shape_cast %101 : vector<2x8xf32> to vector<2x8x1xf32>
    %103 = vector.broadcast %102 : vector<2x8x1xf32> to vector<2x8x8xf32>
    %104 = arith.subf %100, %103 : vector<2x8x8xf32>
    %105 = math.exp %104 : vector<2x8x8xf32>
    %cst_33 = arith.constant dense<0.000000e+00> : vector<2x8xf32>
    %106 = vector.multi_reduction <add>, %105, %cst_33 [2] : vector<2x8x8xf32> to vector<2x8xf32>
    %107 = vector.shape_cast %106 : vector<2x8xf32> to vector<2x8x1xf32>
    %108 = tpu.reciprocal %107 {approx = true} : vector<2x8x1xf32> -> vector<2x8x1xf32>
    %109 = vector.broadcast %108 : vector<2x8x1xf32> to vector<2x8x8xf32>
    %110 = arith.mulf %105, %109 : vector<2x8x8xf32>
    %111 = arith.truncf %110 : vector<2x8x8xf32> to vector<2x8x8xbf16>
    "tpu.trace_start"() <{level = 10 : i32, message = "bqk,bkd->bqd"}> : () -> ()
    %cst_34 = arith.constant dense<0.000000e+00> : vector<2x8x8xf32>
    %112 = tpu.matmul %111, %97, %cst_34 {dimension_numbers = #tpu.dot_dimension_numbers<[2], [1], [1], [2], [0, 0, 0, 1, 1, 2], [0], [0]>} : vector<2x8x8xbf16>, vector<2x8x8xbf16>, vector<2x8x8xf32> -> vector<2x8x8xf32>
    "tpu.trace_stop"() : () -> ()
    %c0_35 = arith.constant 0 : index
    %c0_36 = arith.constant 0 : index
    %c24 = arith.constant 24 : index
    %113 = vector.load %arg12[%c0_35, %c0_36, %c24] : memref<2x8x32xf32, #tpu.memory_space<vmem>>, vector<2x8x8xf32>
    tpu.vector_store %arg12[%c0_35, %c0_36, %c24], %112 {strides = array<i32>} : memref<2x8x32xf32, #tpu.memory_space<vmem>>, vector<2x8x8xf32>,
    %c0_37 = arith.constant 0 : index
    %c0_38 = arith.constant 0 : index
    %c0_39 = arith.constant 0 : index
    %114 = vector.load %arg12[%c0_37, %c0_38, %c0_39] : memref<2x8x32xf32, #tpu.memory_space<vmem>>, vector<2x8x32xf32>
    %115 = vector.shape_cast %114 : vector<2x8x32xf32> to vector<16x32xf32>
    %c0_40 = arith.constant 0 : index
    %c0_41 = arith.constant 0 : index
    %c0_42 = arith.constant 0 : index
    %116 = vector.load %arg5[%c0_40, %c0_41, %c0_42] : memref<1x32x32xbf16, #tpu.memory_space<vmem>>, vector<1x32x32xbf16>
    %117 = vector.shape_cast %116 : vector<1x32x32xbf16> to vector<32x32xbf16>
    %118 = arith.truncf %115 : vector<16x32xf32> to vector<16x32xbf16>
    %cst_43 = arith.constant dense<0.000000e+00> : vector<16x32xf32>
    %119 = tpu.matmul %118, %117, %cst_43 {dimension_numbers = #tpu.dot_dimension_numbers<[1], [0], [0], [1], [0, 0, 1, 1], [], []>} : vector<16x32xbf16>, vector<32x32xbf16>, vector<16x32xf32> -> vector<16x32xf32>
    %120 = vector.broadcast %6 : vector<1x32xf32> to vector<16x32xf32>
    %121 = arith.addf %119, %120 : vector<16x32xf32>
    %122 = arith.addf %14, %121 : vector<16x32xf32>
    %cst_44 = arith.constant dense<0.000000e+00> : vector<16xf32>
    %123 = vector.multi_reduction <add>, %122, %cst_44 [1] : vector<16x32xf32> to vector<16xf32>
    %124 = vector.shape_cast %123 : vector<16xf32> to vector<16x1xf32>
    %cst_45 = arith.constant 3.200000e+01 : f32
    %125 = vector.broadcast %cst_45 : f32 to vector<16x1xf32>
    %126 = arith.divf %124, %125 : vector<16x1xf32>
    %127 = vector.broadcast %126 : vector<16x1xf32> to vector<16x32xf32>
    %128 = arith.subf %122, %127 : vector<16x32xf32>
    %129 = arith.mulf %128, %128 : vector<16x32xf32>
    %cst_46 = arith.constant dense<0.000000e+00> : vector<16xf32>
    %130 = vector.multi_reduction <add>, %129, %cst_46 [1] : vector<16x32xf32> to vector<16xf32>
    %131 = vector.shape_cast %130 : vector<16xf32> to vector<16x1xf32>
    %cst_47 = arith.constant 3.200000e+01 : f32
    %132 = vector.broadcast %cst_47 : f32 to vector<16x1xf32>
    %133 = arith.divf %131, %132 : vector<16x1xf32>
    %cst_48 = arith.constant 9.99999974E-6 : f32
    %134 = vector.broadcast %cst_48 : f32 to vector<16x1xf32>
    %135 = arith.addf %133, %134 : vector<16x1xf32>
    %136 = math.rsqrt %135 : vector<16x1xf32>
    %137 = vector.broadcast %136 : vector<16x1xf32> to vector<16x32xf32>
    %138 = arith.mulf %128, %137 : vector<16x32xf32>
    %139 = vector.broadcast %7 : vector<1x32xf32> to vector<16x32xf32>
    %140 = arith.mulf %138, %139 : vector<16x32xf32>
    %141 = vector.broadcast %8 : vector<1x32xf32> to vector<16x32xf32>
    %142 = arith.addf %140, %141 : vector<16x32xf32>
    %c0_49 = arith.constant 0 : index
    %c0_50 = arith.constant 0 : index
    %c0_51 = arith.constant 0 : index
    %143 = vector.load %arg6[%c0_49, %c0_50, %c0_51] : memref<1x32x64xbf16, #tpu.memory_space<vmem>>, vector<1x32x64xbf16>
    %144 = vector.shape_cast %143 : vector<1x32x64xbf16> to vector<32x64xbf16>
    %145 = arith.truncf %142 : vector<16x32xf32> to vector<16x32xbf16>
    %cst_52 = arith.constant dense<0.000000e+00> : vector<16x64xf32>
    %146 = tpu.matmul %145, %144, %cst_52 {dimension_numbers = #tpu.dot_dimension_numbers<[1], [0], [0], [1], [0, 0, 1, 1], [], []>} : vector<16x32xbf16>, vector<32x64xbf16>, vector<16x64xf32> -> vector<16x64xf32>
    %147 = vector.broadcast %9 : vector<1x64xf32> to vector<16x64xf32>
    %148 = arith.addf %146, %147 : vector<16x64xf32>
    %cst_53 = arith.constant 0.000000e+00 : f32
    %149 = vector.broadcast %cst_53 : f32 to vector<16x64xf32>
    %150 = arith.maximumf %148, %149 : vector<16x64xf32>
    %c0_54 = arith.constant 0 : index
    %c0_55 = arith.constant 0 : index
    %c0_56 = arith.constant 0 : index
    %151 = vector.load %arg7[%c0_54, %c0_55, %c0_56] : memref<1x64x32xbf16, #tpu.memory_space<vmem>>, vector<1x64x32xbf16>
    %152 = vector.shape_cast %151 : vector<1x64x32xbf16> to vector<64x32xbf16>
    %153 = arith.truncf %150 : vector<16x64xf32> to vector<16x64xbf16>
    %cst_57 = arith.constant dense<0.000000e+00> : vector<16x32xf32>
    %154 = tpu.matmul %153, %152, %cst_57 {dimension_numbers = #tpu.dot_dimension_numbers<[1], [0], [0], [1], [0, 0, 1, 1], [], []>} : vector<16x64xbf16>, vector<64x32xbf16>, vector<16x32xf32> -> vector<16x32xf32>
    %155 = vector.broadcast %10 : vector<1x32xf32> to vector<16x32xf32>
    %156 = arith.addf %154, %155 : vector<16x32xf32>
    %157 = arith.addf %142, %156 : vector<16x32xf32>
    %cst_58 = arith.constant dense<0.000000e+00> : vector<16xf32>
    %158 = vector.multi_reduction <add>, %157, %cst_58 [1] : vector<16x32xf32> to vector<16xf32>
    %159 = vector.shape_cast %158 : vector<16xf32> to vector<16x1xf32>
    %cst_59 = arith.constant 3.200000e+01 : f32
    %160 = vector.broadcast %cst_59 : f32 to vector<16x1xf32>
    %161 = arith.divf %159, %160 : vector<16x1xf32>
    %162 = vector.broadcast %161 : vector<16x1xf32> to vector<16x32xf32>
    %163 = arith.subf %157, %162 : vector<16x32xf32>
    %164 = arith.mulf %163, %163 : vector<16x32xf32>
    %cst_60 = arith.constant dense<0.000000e+00> : vector<16xf32>
    %165 = vector.multi_reduction <add>, %164, %cst_60 [1] : vector<16x32xf32> to vector<16xf32>
    %166 = vector.shape_cast %165 : vector<16xf32> to vector<16x1xf32>
    %cst_61 = arith.constant 3.200000e+01 : f32
    %167 = vector.broadcast %cst_61 : f32 to vector<16x1xf32>
    %168 = arith.divf %166, %167 : vector<16x1xf32>
    %cst_62 = arith.constant 9.99999974E-6 : f32
    %169 = vector.broadcast %cst_62 : f32 to vector<16x1xf32>
    %170 = arith.addf %168, %169 : vector<16x1xf32>
    %171 = math.rsqrt %170 : vector<16x1xf32>
    %172 = vector.broadcast %171 : vector<16x1xf32> to vector<16x32xf32>
    %173 = arith.mulf %163, %172 : vector<16x32xf32>
    %174 = vector.broadcast %11 : vector<1x32xf32> to vector<16x32xf32>
    %175 = arith.mulf %173, %174 : vector<16x32xf32>
    %176 = vector.broadcast %12 : vector<1x32xf32> to vector<16x32xf32>
    %177 = arith.addf %175, %176 : vector<16x32xf32>
    %178 = vector.shape_cast %177 : vector<16x32xf32> to vector<2x8x32xf32>
    %c0_63 = arith.constant 0 : index
    %c0_64 = arith.constant 0 : index
    %c0_65 = arith.constant 0 : index
    %179 = vector.load %arg11[%c0_63, %c0_64, %c0_65] : memref<2x8x32xf32, #tpu.memory_space<vmem>>, vector<2x8x32xf32>
    tpu.vector_store %arg11[%c0_63, %c0_64, %c0_65], %178 {strides = array<i32>} : memref<2x8x32xf32, #tpu.memory_space<vmem>>, vector<2x8x32xf32>,
    %c1_i32 = arith.constant 1 : i32
    %180 = arith.cmpi eq, %arg1, %c1_i32 : i32
    %181 = arith.extui %180 : i1 to i32
    %c0_i32_66 = arith.constant 0 : i32
    %182 = arith.cmpi ne, %181, %c0_i32_66 : i32
    scf.if %182 {
      %c0_67 = arith.constant 0 : index
      %c0_68 = arith.constant 0 : index
      %183 = vector.load %arg9[%c0_67, %c0_68] : memref<2x32xf32, #tpu.memory_space<vmem>>, vector<1x32xf32>
      %c1 = arith.constant 1 : index
      %c0_69 = arith.constant 0 : index
      %184 = vector.load %arg9[%c1, %c0_69] : memref<2x32xf32, #tpu.memory_space<vmem>>, vector<1x32xf32>
      %cst_70 = arith.constant dense<0.000000e+00> : vector<16xf32>
      %185 = vector.multi_reduction <add>, %177, %cst_70 [1] : vector<16x32xf32> to vector<16xf32>
      %186 = vector.shape_cast %185 : vector<16xf32> to vector<16x1xf32>
      %cst_71 = arith.constant 3.200000e+01 : f32
      %187 = vector.broadcast %cst_71 : f32 to vector<16x1xf32>
      %188 = arith.divf %186, %187 : vector<16x1xf32>
      %189 = vector.broadcast %188 : vector<16x1xf32> to vector<16x32xf32>
      %190 = arith.subf %177, %189 : vector<16x32xf32>
      %191 = arith.mulf %190, %190 : vector<16x32xf32>
      %cst_72 = arith.constant dense<0.000000e+00> : vector<16xf32>
      %192 = vector.multi_reduction <add>, %191, %cst_72 [1] : vector<16x32xf32> to vector<16xf32>
      %193 = vector.shape_cast %192 : vector<16xf32> to vector<16x1xf32>
      %cst_73 = arith.constant 3.200000e+01 : f32
      %194 = vector.broadcast %cst_73 : f32 to vector<16x1xf32>
      %195 = arith.divf %193, %194 : vector<16x1xf32>
      %cst_74 = arith.constant 9.99999974E-6 : f32
      %196 = vector.broadcast %cst_74 : f32 to vector<16x1xf32>
      %197 = arith.addf %195, %196 : vector<16x1xf32>
      %198 = math.rsqrt %197 : vector<16x1xf32>
      %199 = vector.broadcast %198 : vector<16x1xf32> to vector<16x32xf32>
      %200 = arith.mulf %190, %199 : vector<16x32xf32>
      %201 = vector.broadcast %183 : vector<1x32xf32> to vector<16x32xf32>
      %202 = arith.mulf %200, %201 : vector<16x32xf32>
      %203 = vector.broadcast %184 : vector<1x32xf32> to vector<16x32xf32>
      %204 = arith.addf %202, %203 : vector<16x32xf32>
      %205 = vector.shape_cast %204 : vector<16x32xf32> to vector<2x8x32xf32>
      %c0_75 = arith.constant 0 : index
      %c0_76 = arith.constant 0 : index
      %c0_77 = arith.constant 0 : index
      %206 = vector.load %arg10[%c0_75, %c0_76, %c0_77] : memref<2x8x32xf32, #tpu.memory_space<vmem>>, vector<2x8x32xf32>
      tpu.vector_store %arg10[%c0_75, %c0_76, %c0_77], %205 {strides = array<i32>} : memref<2x8x32xf32, #tpu.memory_space<vmem>>, vector<2x8x32xf32>,
    } else {
    }
    return
  }
  func.func @transform_0(%arg0: i32, %arg1: i32) -> (i32, i32, i32) {
    %c0_i32 = arith.constant 0 : i32
    %c0_i32_0 = arith.constant 0 : i32
    %c0_i32_1 = arith.constant 0 : i32
    return %arg0, %c0_i32, %c0_i32_0 : i32, i32, i32
  }
  func.func @transform_1(%arg0: i32, %arg1: i32) -> (i32, i32, i32) {
    %c0_i32 = arith.constant 0 : i32
    %c0_i32_0 = arith.constant 0 : i32
    %c0_i32_1 = arith.constant 0 : i32
    return %arg0, %c0_i32, %c0_i32_0 : i32, i32, i32
  }
  func.func @transform_2(%arg0: i32, %arg1: i32) -> (i32, i32, i32) {
    %c0_i32 = arith.constant 0 : i32
    %c0_i32_0 = arith.constant 0 : i32
    %c0_i32_1 = arith.constant 0 : i32
    return %arg1, %c0_i32, %c0_i32_0 : i32, i32, i32
  }
  func.func @transform_3(%arg0: i32, %arg1: i32) -> (i32, i32, i32) {
    %c0_i32 = arith.constant 0 : i32
    %c0_i32_0 = arith.constant 0 : i32
    %c0_i32_1 = arith.constant 0 : i32
    return %arg1, %c0_i32, %c0_i32_0 : i32, i32, i32
  }
  func.func @transform_4(%arg0: i32, %arg1: i32) -> (i32, i32, i32) {
    %c0_i32 = arith.constant 0 : i32
    %c0_i32_0 = arith.constant 0 : i32
    %c0_i32_1 = arith.constant 0 : i32
    return %arg1, %c0_i32, %c0_i32_0 : i32, i32, i32
  }
  func.func @transform_5(%arg0: i32, %arg1: i32) -> (i32, i32, i32) {
    %c0_i32 = arith.constant 0 : i32
    %c0_i32_0 = arith.constant 0 : i32
    %c0_i32_1 = arith.constant 0 : i32
    return %arg1, %c0_i32, %c0_i32_0 : i32, i32, i32
  }
  func.func @transform_6(%arg0: i32, %arg1: i32) -> (i32, i32, i32) {
    %c0_i32 = arith.constant 0 : i32
    %c0_i32_0 = arith.constant 0 : i32
    %c0_i32_1 = arith.constant 0 : i32
    return %arg1, %c0_i32, %c0_i32_0 : i32, i32, i32
  }
  func.func @transform_7(%arg0: i32, %arg1: i32) -> (i32, i32) {
    %c0_i32 = arith.constant 0 : i32
    %c0_i32_0 = arith.constant 0 : i32
    %c0_i32_1 = arith.constant 0 : i32
    return %c0_i32, %c0_i32_0 : i32, i32
  }
  func.func @transform_8(%arg0: i32, %arg1: i32) -> (i32, i32, i32) {
    %c0_i32 = arith.constant 0 : i32
    %c0_i32_0 = arith.constant 0 : i32
    %c0_i32_1 = arith.constant 0 : i32
    return %arg0, %c0_i32, %c0_i32_0 : i32, i32, i32
  }
}

</mosaic_0001>

<bundles_post_ra>
// kernel: tpu_custom_call.1
= control target key start
LH: loop header
LB: loop body
LE: loop exit
PB: predicated region body
PF: predicated region fallthrough
CT: control target
= control target key end

     0   :  { %13 = vsyncpa [#allocation5], 0  ;;  %s2785_s0 = inlined_call_operand.hbm [shape: f32[2,8,32], index: 0, kind: input, shape index: {}]   ;;  %s2786_s1 = inlined_call_operand.vmem [shape: f32[2,1,8], index: 1, kind: input, shape index: {}]   ;;  %s2787_s2 = inlined_call_operand.vmem [shape: bf16[2,32,96], index: 2, kind: input, shape index: {}]   ;;  %s2788_s3 = inlined_call_operand.vmem [shape: bf16[2,32,32], index: 3, kind: input, shape index: {}]   ;;  %s2789_s4 = inlined_call_operand.vmem [shape: bf16[2,32,64], index: 4, kind: input, shape index: {}]   ;;  %s2790_s5 = inlined_call_operand.vmem [shape: bf16[2,64,32], index: 5, kind: input, shape index: {}]   ;;  %s2791_s6 = inlined_call_operand.vmem [shape: f32[2,8,96], index: 6, kind: input, shape index: {}]   ;;  %s2792_s7 = inlined_call_operand.vmem [shape: f32[2,32], index: 7, kind: input, shape index: {}]   ;;  %s2793_s8 = inlined_call_operand.hbm [shape: f32[2,8,32], index: 8, kind: output, shape index: {}]  }
   0x1   :  { %14 = vsyncpa [#allocation6], 0  ;;  %s2426_s27 = smov 0   ;;  %s2428_s28 = smov 0  }
   0x2   :  { %s2430_s29 = smov 0  }
   0x3 LB: > { %s2797_s30 = sadd.s32 4294967295, %s2358_s29   ;;  %s29_s9 = sadd.s32 1, %s2354_s28  ;;  %s2358_s29 = sphi %s2430_s29, %s20_s29   ;;  %s2354_s28 = sphi %s2428_s28, %s2806_s28   ;;  %s2350_s27 = sphi %s2426_s27, %s2805_s27  }
   0x4   : > { %p30_p0 = scmp.ge.s32.totalorder %s29_s9, 2  ;;  %p1922_p1 = scmp.ge.s32.totalorder %s2358_s29, 1 }
   0x5   : > { %p266_p2 = scmp.lt.s32.totalorder %s2358_s29, 3  ;;  %p2453_p4 = scmp.eq.s32.totalorder %s2797_s30, 0 }
   0x6   : > { %s2808_s9 = smov (%p30_p0, %s29_s9), 0  ;;  %s2360_s12 = smov [#allocation4]  }
   0x7   : > { %p2447_p3 = pnand %p1922_p1, %p266_p2  ;;  %s281_s13 = sshll.u32 %s2360_s12, 4  ;;  %s282_s13 = int_to_ptr.vmem [resolvable:$true] %s281_s13 }
   0x8   : > { %s2799_s11 = scalar_select %p2453_p4, 1, 0 }
   0x9   : > { %s2798_s10 = scalar_select %p2447_p3, 1, 0 }
   0xa   : > { %p2167_p5 = pneg %p2447_p3  ;;  %s2274_s17 = scalar_lea.hbm %s2785_s0, 256 }
   0xb   : > { %p2275_p7 = scmp.ne.s32.totalorder %s2785_s0, %s2274_s17  ;;  %p2281_p11 = scmp.lt.u32.totalorder %s2274_s17, %s2785_s0 }
   0xc   : > { %p2461_p6 = pnand %p2453_p4, %p2167_p5 }
   0xe   : > { %p2276_p8 = pneg %p2461_p6 }
  0x10   : > { %p2277_p9 = pnand %p2276_p8, %p2275_p7 }
  0x12   : > { %p2278_p10 = pneg %p2277_p9 }
  0x14   : > { %p2283_p12 = pnand %p2281_p11, %p2278_p10 }
  0x16   : > { %2286 = shalt.err (!%p2283_p12)
}
  0x17   : > { %s2287_s22 = scalar_lea.vmem %s282_s13, 256  ;;  %p2295_p2 = scmp.lt.s32.totalorder %s282_s13, %s282_s13 }
  0x18   : > { %p2288_p13 = scmp.ne.s32.totalorder %s282_s13, %s2287_s22  ;;  %p2296_p5 = scmp.lt.s32.totalorder %s2287_s22, %s2287_s22 }
  0x1a   : > { %p2290_p0 = pnand %p2288_p13, %p2276_p8  ;;  %p2297_p4 = por %p2296_p5, %p2295_p2 }
  0x1c   : > { %p2291_p1 = pneg %p2290_p0 }
  0x1e   : > { %p2298_p3 = pnand %p2297_p4, %p2291_p1 }
  0x20   : > { %2301 = shalt.err (!%p2298_p3)
}
  0x21   : > { %s2361_s23 = smov 128   ;;  %s2362_s24 = smov 8  }
  0x22   : > { %2170 = dma.hbm_to_vmem [thread:$0]  (!%p2461_p6), %s2785_s0, 256, %s282_s13, [#allocation5], %s2361_s23, %s2361_s23, %s2362_s24  }
  0x23   : > { %p2801_p7 = scmp.ne.s32.totalorder %s2798_s10, 0 }
  0x24   : > { %p2802_p9 = scmp.ne.s32.totalorder (!%p2801_p7), %s2799_s11, 0 }
  0x25   : > { %347 = sbr.rel (%p2801_p7) target bundleno = 4516 (0x11a4), region = 52 }
  0x2c   : > { %2341 = dma.done.wait (%p2802_p9), [#allocation5], 256  }
  0x2d   : > { %2343 = vsyncadd (%p2802_p9), [#allocation5], 4294967040  ;;  %p405_p3 = scmp.lt.s32.totalorder %s2350_s27, 1  ;;  %p1937_p4 = scmp.ne.s32.totalorder %s2350_s27, 0 }
  0x2e   : > { %v435_v0 = vld [vmem:[#allocation4] sm:$0xff] (!%p1937_p4)  ;;  %vm437_vm0 = vcmask (!%p1937_p4), 261120   ;;  %v436_v1 = vld [vmem:[#allocation4 + $0x8] sm:$0xff] (!%p1937_p4) }
  0x2f   : > { %s406_s12 = scalar_select %p405_p3, %s2350_s27, 1 }
  0x30   : > { %434 = sbr.rel (%p1937_p4) target bundleno = 55 (0x37), region = 60  ;;  %438 = vst.msk [vmem:[#allocation2] sm:$0xff] (!%p1937_p4), %vm437_vm0, %v435_v0  ;;  %439 = vst.msk [vmem:[#allocation2 + $0x8] sm:$0xff] (!%p1937_p4), %vm437_vm0, %v436_v1 }
  0x31   : > { %s1977_s15 = sshll.u32 %s406_s12, 4  ;;  %s1980_s16 = sshll.u32 %s406_s12, 5 }
  0x32   : > { %s409_s18 = scalar_lea.vmem %s2787_s2, %s1977_s15  ;;  %s2495_s10 = scalar_lea.vmem %s2788_s3, %s1977_s15 }
  0x33   : > { %s2500_s11 = scalar_lea.vmem %s2789_s4, %s1977_s15  ;;  %s2505_s24 = scalar_lea.vmem %s2790_s5, %s1980_s16 }
  0x34   : > { %s1936_s25 = sshll.u32 %s406_s12, 3 }
  0x35   : > { %s428_s14 = scalar_lea.vmem %s2791_s6, %s1936_s25 }
  0x37 PF: > { %v2220_v2 = vld [vmem:[%s409_s18] sm:$0xff]   ;;  %v2363_v3 = vmov 0.0   ;;  %v2221_v4 = vld [vmem:[%s409_s18 + $0x8] sm:$0xff]   ;;  %vm2364_vm1 = vmmov 0   ;;  %vm464_vm2 = vcmask 261120   ;;  %v448_v8 = vlaneseq  ;;  %s2365_s30 = smov 96  }
  0x38   : > { %2027 = vmatprep.subr.bf16.mxu0 %v2363_v3  ;;  %2035 = vmatprep.subr.bf16.mxu1 %v2363_v3  ;;  %v2515_v5 = vld [vmem:[#allocation2] sm:$0xff]  ;;  %v2517_v6 = vld [vmem:[#allocation2 + $0x8] sm:$0xff]  ;;  %vm528_vm3 = vcmask 64512   ;;  %s2366_s18 = smov 64   ;;  %s2367_s13 = smov 88   ;;  %vm653_vm4 = vcmask 1043456  }
  0x39   : > { %2028 = vmatpush3.bf16.msra.mxu0 %v2220_v2  ;;  %2031 = vmatprep.mubr.msk.bf16.mxu0 %vm2364_vm1, %v2363_v3  ;;  %v447_v7 = vpack.c.bf16 %v2517_v6, %v2515_v5  ;;  %v2528_v9 = vshrl.u32 %v448_v8, 7  ;;  %v2531_v11 = vld [vmem:[%s428_s14] sm:$0xff]  ;;  %s2368_s19 = smov 120   ;;  %s2369_s20 = smov 56   ;;  %vm975_vm5 = vcmask 130112   ;;  %vm1206_vm6 = vcmask 195712  }
  0x3a   : > { %2029 = vmatprep.subr.bf16.mxu0 %v2363_v3  ;;  %2037 = vmatprep.mubr.msk.bf16.mxu1 %vm2364_vm1, %v2363_v3  ;;  %v2555_v25 = vld [vmem:[%s2786_s1] ss:$0 sm:$0xff]  ;;  %v2561_v30 = vld [vmem:[%s2786_s1 + $0x1] ss:$0 sm:$0xff]  ;;  %s2370_s21 = smov 80   ;;  %s2371_s22 = smov 112  }
  0x3b   : > { %v450_v10 = vsub.s32 0, %v2528_v9  ;;  %s2372_s23 = smov 48   ;;  %s2373_s25 = smov 72   ;;  %vm1437_vm7 = vcmask 261312   ;;  %vm1652_vm8 = vcmask 523264  }
  0x3c   : > { %s2374_s26 = smov 104   ;;  %s2375_s14 = smov 40  }
  0x3d   : > { %2030 = vmatpush3.bf16.msra.mxu0 %v2221_v4  ;;  %v451_v12 = vrot.slane %v2531_v11, %v450_v10  ;;  %s2377_s12 = smov 16   ;;  %s2378_s15 = smov 24  }
  0x3e   : > { %2041 = vmatprep.subr.bf16.mxu0 %v2363_v3  ;;  %p1970_p6 = scmp.ne.s32.totalorder %s2350_s27, 1 }
  0x40   : > { %2032 = vmatmul.mubr.msk.bf16.vlgmr.msra.gmra.mrb[0].mxu0 %vm464_vm2, %v447_v7 }
  0x41   : > { %2043 = vmatprep.mubr.msk.bf16.mxu0 %vm2364_vm1, %v2363_v3 }
 0x113   : > { %v502_v13 = vpop.f32.mrb[0].mxu0 }
 0x114   : > { %v503_v14 = vadd.f32 %v502_v13, %v451_v12  ;;  %v2033_v15 = vpop.f32.mrb[1].mxu0 }
 0x115   : > { %v505_v16 = vpop.f32.mrb[2].mxu0 }
 0x116   : > { %v2534_v17 = vpack.c.bf16 %v503_v14, %v503_v14  ;;  %v506_v18 = vadd.f32 %v505_v16, %v451_v12  ;;  %v2034_v19 = vpop.f32.mrb[3].mxu0 }
 0x118   : > { %526 = vrot.lane.b32.xlu0 %v2534_v17, %s2365_s30  ;;  %v2537_v20 = vpack.c.bf16 %v506_v18, %v506_v18 }
 0x11c   : > { %576 = vrot.lane.b32.xlu0 %v2537_v20, %s2365_s30  ;;  %s2376_s30 = smov 8  }
 0x18a   : > { %v527_v21 = vpop.permute.xlu0 %526 }
 0x18b   : > { %v533_v22 = vsel %vm528_vm3, %v527_v21, 0 }
 0x18c   : > { %2036 = vmatpush3.bf16.xpose.msra.mxu1 %v533_v22 }
 0x18d   : > { %2047 = vmatprep.subr.bf16.mxu1 %v2363_v3 }
 0x18e   : > { %v577_v23 = vpop.permute.xlu0 %576 }
 0x18f   : > { %v582_v24 = vsel %vm528_vm3, %v577_v23, 0 }
 0x190   : > { %2042 = vmatpush3.bf16.xpose.msra.mxu0 %v582_v24 }
 0x191   : > { %2053 = vmatprep.subr.bf16.mxu0 %v2363_v3 }
 0x193   : > { %2038 = vmatmul.mubr.msk.bf16.vlgmr.msra.gmra.mrb[0].mxu1 %vm528_vm3, %v2534_v17 }
 0x194   : > { %2049 = vmatprep.mubr.msk.bf16.mxu1 %vm2364_vm1, %v2363_v3 }
 0x197   : > { %2044 = vmatmul.mubr.msk.bf16.vlgmr.msra.gmra.mrb[4].mxu0 %vm528_vm3, %v2537_v20 }
 0x198   : > { %2055 = vmatprep.mubr.msk.bf16.mxu0 %vm2364_vm1, %v2363_v3 }
 0x266   : > { %v569_v26 = vpop.f32.mrb[0].mxu1 }
 0x267   : > { %v570_v27 = vadd.f32 %v2555_v25, %v569_v26  ;;  %v2039_v28 = vpop.f32.mrb[1].mxu1 }
 0x268   : > { %v572_v29 = vpop.f32.mrb[2].mxu1 }
 0x269   : > { %v2040_v31 = vpop.f32.mrb[3].mxu1  ;;  %v624_v32 = vsel %vm528_vm3, %v570_v27, -inf }
 0x26a   : > { %625 = vmax.xlane.f32.xlu1 %v624_v32  ;;  %v618_v33 = vpop.f32.mrb[4].mxu0 }
 0x26b   : > { %v619_v34 = vadd.f32 %v2561_v30, %v618_v33  ;;  %v2045_v35 = vpop.f32.mrb[5].mxu0 }
 0x26c   : > { %v621_v36 = vpop.f32.mrb[6].mxu0 }
 0x26d   : > { %v2046_v37 = vpop.f32.mrb[7].mxu0  ;;  %v627_v38 = vsel %vm528_vm3, %v619_v34, -inf }
 0x26e   : > { %628 = vmax.xlane.f32.xlu1 %v627_v38 }
 0x27f   : > { %648 = vrot.lane.b32.xlu1 %v2534_v17, %s2366_s18 }
 0x283   : > { %697 = vrot.lane.b32.xlu1 %v2537_v20, %s2366_s18 }
 0x287   : > { %749 = vrot.lane.b32.xlu1 %v2534_v17, %s2367_s13 }
 0x2f7   : > { %v626_v39 = vpop.xlane.xlu1 %625 }
 0x2f8   : > { %v630_v40 = vsub.f32 %v570_v27, %v626_v39 }
 0x2fa   : > { %v632_v41 = vmul.f32 1.442695, %v630_v40 }
 0x2fb   : > { %v629_v42 = vpop.xlane.xlu1 %628 }
 0x2fc   : > { %2230 = vpow2.f32 %v632_v41  ;;  %v631_v43 = vsub.f32 %v619_v34, %v629_v42 }
 0x2fe   : > { %v634_v44 = vmul.f32 1.442695, %v631_v43 }
 0x2ff   : > { %v649_v45 = vpop.permute.xlu1 %648 }
 0x300   : > { %2232 = vpow2.f32 %v634_v44  ;;  %v655_v46 = vsel %vm653_vm4, %v649_v45, 0 }
 0x301   : > { %2048 = vmatpush3.bf16.msra.mxu1 %v655_v46 }
 0x302   : > { %2059 = vmatprep.subr.bf16.mxu1 %v2363_v3 }
 0x303   : > { %v698_v47 = vpop.permute.xlu1 %697 }
 0x304   : > { %v703_v48 = vsel %vm653_vm4, %v698_v47, 0 }
 0x305   : > { %2054 = vmatpush3.bf16.msra.mxu0 %v703_v48 }
 0x306   : > { %v2231_v49 = vpop.eup %2230  ;;  %2065 = vmatprep.subr.bf16.mxu0 %v2363_v3 }
 0x307   : > { %v636_v50 = vsel %vm528_vm3, %v2231_v49, 0.0  ;;  %v750_v53 = vpop.permute.xlu1 %749 }
 0x308   : > { %637 = vadd.xlane.f32.xlu0 %v636_v50  ;;  %v755_v60 = vsel %vm528_vm3, %v750_v53, 0 }
 0x30a   : > { %v2233_v51 = vpop.eup %2232 }
 0x30b   : > { %v639_v52 = vsel %vm528_vm3, %v2233_v51, 0.0 }
 0x30c   : > { %640 = vadd.xlane.f32.xlu1 %v639_v52 }
 0x31d   : > { %799 = vrot.lane.b32.xlu1 %v2537_v20, %s2367_s13 }
 0x31e   : > { %747 = vrot.lane.b32.xlu0 %v2534_v17, %s2368_s19 }
 0x321   : > { %797 = vrot.lane.b32.xlu1 %v2537_v20, %s2368_s19 }
 0x395   : > { %v638_v54 = vpop.xlane.xlu0 %637 }
 0x396   : > { %2234 = vrcp.f32 %v638_v54 }
 0x399   : > { %v641_v55 = vpop.xlane.xlu1 %640  ;;  %v748_v1 = vpop.permute.xlu0 %747 }
 0x39a   : > { %2236 = vrcp.f32 %v641_v55 }
 0x39d   : > { %v800_v62 = vpop.permute.xlu1 %799 }
 0x39e   : > { %v805_v0 = vsel %vm528_vm3, %v800_v62, 0 }
 0x3a0   : > { %v2235_v56 = vpop.eup %2234 }
 0x3a1   : > { %v644_v57 = vmul.f32 %v2235_v56, %v2231_v49  ;;  %v798_v2 = vpop.permute.xlu1 %797 }
 0x3a3   : > { %v646_v58 = vpack.c.bf16 %v644_v57, %v644_v57 }
 0x3a4   : > { %v2237_v59 = vpop.eup %2236 }
 0x3a5   : > { %v645_v61 = vmul.f32 %v2237_v59, %v2233_v51  ;;  %2050 = vmatmul.mubr.msk.bf16.vlgmr.msra.gmra.mrb[4].mxu1 %vm528_vm3, %v646_v58 }
 0x3a6   : > { %2060 = vmatpush3.bf16.xpose.msra.mxu1 %v755_v60  ;;  %2061 = vmatprep.mubr.msk.bf16.mxu1 %vm2364_vm1, %v2363_v3 }
 0x3a7   : > { %v647_v63 = vpack.c.bf16 %v645_v61, %v645_v61  ;;  %2071 = vmatprep.subr.bf16.mxu1 %v2363_v3 }
 0x3a9   : > { %2056 = vmatmul.mubr.msk.bf16.vlgmr.msra.gmra.mrb[8].mxu0 %vm528_vm3, %v647_v63 }
 0x3aa   : > { %2066 = vmatpush3.bf16.xpose.msra.mxu0 %v805_v0  ;;  %2067 = vmatprep.mubr.msk.bf16.mxu0 %vm2364_vm1, %v2363_v3 }
 0x3ab   : > { %2077 = vmatprep.subr.bf16.mxu0 %v2363_v3 }
 0x3ad   : > { %2062 = vmatmul.mubr.msk.bf16.vlgmr.msra.gmra.mrb[8].mxu1 %vm528_vm3, %v748_v1 }
 0x3ae   : > { %2073 = vmatprep.mubr.msk.bf16.mxu1 %vm2364_vm1, %v2363_v3 }
 0x3b1   : > { %2068 = vmatmul.mubr.msk.bf16.vlgmr.msra.gmra.mrb[12].mxu0 %vm528_vm3, %v798_v2 }
 0x3b2   : > { %2079 = vmatprep.mubr.msk.bf16.mxu0 %vm2364_vm1, %v2363_v3 }
 0x478   : > { %v691_v4 = vpop.f32.mrb[4].mxu1 }
 0x479   : > { %745 = vst.msk [vmem:[#allocation3] sm:$0xff] %vm528_vm3, %v691_v4  ;;  %v2051_v7 = vpop.f32.mrb[5].mxu1 }
 0x47a   : > { %v694_v8 = vpop.f32.mrb[6].mxu1 }
 0x47b   : > { %v2052_v10 = vpop.f32.mrb[7].mxu1 }
 0x47c   : > { %v739_v12 = vpop.f32.mrb[8].mxu0 }
 0x47d   : > { %746 = vst.msk [vmem:[#allocation3 + $0x8] sm:$0xff] %vm528_vm3, %v739_v12  ;;  %v2057_v13 = vpop.f32.mrb[9].mxu0 }
 0x47e   : > { %v742_v14 = vpop.f32.mrb[10].mxu0 }
 0x47f   : > { %v2058_v15 = vpop.f32.mrb[11].mxu0 }
 0x480   : > { %v791_v16 = vpop.f32.mrb[8].mxu1 }
 0x481   : > { %v792_v18 = vadd.f32 %v2555_v25, %v791_v16  ;;  %v2063_v19 = vpop.f32.mrb[9].mxu1 }
 0x482   : > { %v794_v21 = vpop.f32.mrb[10].mxu1 }
 0x483   : > { %v2064_v22 = vpop.f32.mrb[11].mxu1  ;;  %v847_v23 = vsel %vm528_vm3, %v792_v18, -inf }
 0x484   : > { %v841_v24 = vpop.f32.mrb[12].mxu0  ;;  %848 = vmax.xlane.f32.xlu1 %v847_v23 }
 0x485   : > { %v842_v26 = vadd.f32 %v2561_v30, %v841_v24  ;;  %v2069_v27 = vpop.f32.mrb[13].mxu0 }
 0x486   : > { %v844_v28 = vpop.f32.mrb[14].mxu0 }
 0x487   : > { %v2070_v29 = vpop.f32.mrb[15].mxu0  ;;  %v850_v31 = vsel %vm528_vm3, %v842_v26, -inf }
 0x488   : > { %851 = vmax.xlane.f32.xlu0 %v850_v31 }
 0x495   : > { %871 = vrot.lane.b32.xlu1 %v2534_v17, %s2369_s20 }
 0x499   : > { %980 = vrot.lane.b32.xlu1 %v2534_v17, %s2370_s21 }
 0x49e   : > { %919 = vrot.lane.b32.xlu0 %v2537_v20, %s2369_s20 }
 0x4a2   : > { %978 = vrot.lane.b32.xlu0 %v2534_v17, %s2371_s22 }
 0x511   : > { %v849_v32 = vpop.xlane.xlu1 %848 }
 0x512   : > { %v853_v33 = vsub.f32 %v792_v18, %v849_v32 }
 0x514   : > { %v855_v34 = vmul.f32 1.442695, %v853_v33 }
 0x515   : > { %v872_v35 = vpop.permute.xlu1 %871  ;;  %v852_v36 = vpop.xlane.xlu0 %851 }
 0x516   : > { %2238 = vpow2.f32 %v855_v34  ;;  %v877_v37 = vsel %vm653_vm4, %v872_v35, 0  ;;  %v854_v38 = vsub.f32 %v842_v26, %v852_v36 }
 0x517   : > { %2072 = vmatpush3.bf16.msra.mxu1 %v877_v37 }
 0x518   : > { %v857_v39 = vmul.f32 1.442695, %v854_v38  ;;  %2083 = vmatprep.subr.bf16.mxu1 %v2363_v3 }
 0x519   : > { %v920_v40 = vpop.permute.xlu0 %919  ;;  %v981_v46 = vpop.permute.xlu1 %980 }
 0x51a   : > { %2240 = vpow2.f32 %v857_v39  ;;  %v925_v41 = vsel %vm653_vm4, %v920_v40, 0  ;;  %v986_v53 = vsel %vm528_vm3, %v981_v46, 0 }
 0x51b   : > { %2078 = vmatpush3.bf16.msra.mxu0 %v925_v41 }
 0x51c   : > { %2089 = vmatprep.subr.bf16.mxu0 %v2363_v3 }
 0x51d   : > { %v979_v58 = vpop.permute.xlu0 %978 }
 0x520   : > { %v2239_v42 = vpop.eup %2238 }
 0x521   : > { %v859_v43 = vsel %vm528_vm3, %v2239_v42, 0.0 }
 0x522   : > { %860 = vadd.xlane.f32.xlu1 %v859_v43 }
 0x524   : > { %v2241_v44 = vpop.eup %2240 }
 0x525   : > { %v862_v45 = vsel %vm528_vm3, %v2241_v44, 0.0 }
 0x526   : > { %863 = vadd.xlane.f32.xlu1 %v862_v45 }
 0x537   : > { %1030 = vrot.lane.b32.xlu1 %v2537_v20, %s2370_s21 }
 0x53b   : > { %1028 = vrot.lane.b32.xlu1 %v2537_v20, %s2371_s22 }
 0x5af   : > { %v861_v47 = vpop.xlane.xlu1 %860 }
 0x5b0   : > { %2242 = vrcp.f32 %v861_v47 }
 0x5b3   : > { %v864_v48 = vpop.xlane.xlu1 %863 }
 0x5b4   : > { %2244 = vrcp.f32 %v864_v48 }
 0x5b7   : > { %v1031_v55 = vpop.permute.xlu1 %1030 }
 0x5b8   : > { %v1036_v57 = vsel %vm528_vm3, %v1031_v55, 0 }
 0x5ba   : > { %v2243_v49 = vpop.eup %2242 }
 0x5bb   : > { %v867_v50 = vmul.f32 %v2243_v49, %v2239_v42  ;;  %v1029_v59 = vpop.permute.xlu1 %1028 }
 0x5bd   : > { %v869_v51 = vpack.c.bf16 %v867_v50, %v867_v50 }
 0x5be   : > { %v2245_v52 = vpop.eup %2244 }
 0x5bf   : > { %v868_v54 = vmul.f32 %v2245_v52, %v2241_v44  ;;  %2074 = vmatmul.mubr.msk.bf16.vlgmr.msra.gmra.mrb[12].mxu1 %vm528_vm3, %v869_v51 }
 0x5c0   : > { %2084 = vmatpush3.bf16.xpose.msra.mxu1 %v986_v53  ;;  %2085 = vmatprep.mubr.msk.bf16.mxu1 %vm2364_vm1, %v2363_v3 }
 0x5c1   : > { %v870_v56 = vpack.c.bf16 %v868_v54, %v868_v54  ;;  %2095 = vmatprep.subr.bf16.mxu1 %v2363_v3 }
 0x5c3   : > { %2080 = vmatmul.mubr.msk.bf16.vlgmr.msra.gmra.mrb[16].mxu0 %vm528_vm3, %v870_v56 }
 0x5c4   : > { %2090 = vmatpush3.bf16.xpose.msra.mxu0 %v1036_v57  ;;  %2091 = vmatprep.mubr.msk.bf16.mxu0 %vm2364_vm1, %v2363_v3 }
 0x5c5   : > { %2101 = vmatprep.subr.bf16.mxu0 %v2363_v3 }
 0x5c7   : > { %2086 = vmatmul.mubr.msk.bf16.vlgmr.msra.gmra.mrb[16].mxu1 %vm528_vm3, %v979_v58 }
 0x5c8   : > { %2097 = vmatprep.mubr.msk.bf16.mxu1 %vm2364_vm1, %v2363_v3 }
 0x5cb   : > { %2092 = vmatmul.mubr.msk.bf16.vlgmr.msra.gmra.mrb[20].mxu0 %vm528_vm3, %v1029_v59 }
 0x5cc   : > { %2103 = vmatprep.mubr.msk.bf16.mxu0 %vm2364_vm1, %v2363_v3 }
 0x692   : > { %v2628_v60 = vpop.f32.mrb[12].mxu1 }
 0x693   : > { %v2075_v61 = vpop.f32.mrb[13].mxu1 }
 0x694   : > { %v916_v62 = vpop.f32.mrb[14].mxu1 }
 0x695   : > { %v2076_v63 = vpop.f32.mrb[15].mxu1 }
 0x696   : > { %v2630_v0 = vpop.f32.mrb[16].mxu0 }
 0x697   : > { %v2081_v1 = vpop.f32.mrb[17].mxu0 }
 0x698   : > { %v964_v2 = vpop.f32.mrb[18].mxu0 }
 0x699   : > { %v2082_v4 = vpop.f32.mrb[19].mxu0 }
 0x69a   : > { %v1022_v7 = vpop.f32.mrb[16].mxu1 }
 0x69b   : > { %v1023_v8 = vadd.f32 %v2555_v25, %v1022_v7  ;;  %v2087_v10 = vpop.f32.mrb[17].mxu1 }
 0x69c   : > { %v1025_v12 = vpop.f32.mrb[18].mxu1 }
 0x69d   : > { %v2088_v13 = vpop.f32.mrb[19].mxu1  ;;  %v1078_v14 = vsel %vm528_vm3, %v1023_v8, -inf }
 0x69e   : > { %v1072_v15 = vpop.f32.mrb[20].mxu0  ;;  %1079 = vmax.xlane.f32.xlu0 %v1078_v14 }
 0x69f   : > { %v1073_v16 = vadd.f32 %v2561_v30, %v1072_v15  ;;  %v2093_v18 = vpop.f32.mrb[21].mxu0 }
 0x6a0   : > { %v1075_v19 = vpop.f32.mrb[22].mxu0 }
 0x6a1   : > { %v2094_v21 = vpop.f32.mrb[23].mxu0  ;;  %v1081_v22 = vsel %vm528_vm3, %v1073_v16, -inf }
 0x6a2   : > { %1082 = vmax.xlane.f32.xlu1 %v1081_v22 }
 0x6b3   : > { %1102 = vrot.lane.b32.xlu1 %v2534_v17, %s2372_s23 }
 0x6b7   : > { %1211 = vrot.lane.b32.xlu1 %v2534_v17, %s2373_s25 }
 0x6bb   : > { %1261 = vrot.lane.b32.xlu1 %v2537_v20, %s2373_s25 }
 0x6bf   : > { %1259 = vrot.lane.b32.xlu1 %v2537_v20, %s2374_s26 }
 0x72b   : > { %v1080_v23 = vpop.xlane.xlu0 %1079 }
 0x72c   : > { %v1084_v24 = vsub.f32 %v1023_v8, %v1080_v23 }
 0x72e   : > { %v1086_v26 = vmul.f32 1.442695, %v1084_v24 }
 0x72f   : > { %v1083_v27 = vpop.xlane.xlu1 %1082 }
 0x730   : > { %2246 = vpow2.f32 %v1086_v26  ;;  %v1085_v28 = vsub.f32 %v1073_v16, %v1083_v27 }
 0x732   : > { %v1088_v29 = vmul.f32 1.442695, %v1085_v28 }
 0x733   : > { %v1103_v31 = vpop.permute.xlu1 %1102 }
 0x734   : > { %2248 = vpow2.f32 %v1088_v29  ;;  %v1108_v32 = vsel %vm653_vm4, %v1103_v31, 0 }
 0x735   : > { %2096 = vmatpush3.bf16.msra.mxu1 %v1108_v32 }
 0x736   : > { %2107 = vmatprep.subr.bf16.mxu1 %v2363_v3 }
 0x737   : > { %v1212_v42 = vpop.permute.xlu1 %1211 }
 0x738   : > { %v1217_v46 = vsel %vm528_vm3, %v1212_v42, 0 }
 0x73a   : > { %v2247_v33 = vpop.eup %2246 }
 0x73b   : > { %v1090_v34 = vsel %vm528_vm3, %v2247_v33, 0.0  ;;  %v1262_v48 = vpop.permute.xlu1 %1261 }
 0x73c   : > { %1091 = vadd.xlane.f32.xlu0 %v1090_v34  ;;  %v1267_v50 = vsel %vm528_vm3, %v1262_v48, 0 }
 0x73e   : > { %v2249_v35 = vpop.eup %2248 }
 0x73f   : > { %v1093_v36 = vsel %vm528_vm3, %v2249_v35, 0.0  ;;  %v1260_v52 = vpop.permute.xlu1 %1259 }
 0x740   : > { %1094 = vadd.xlane.f32.xlu0 %v1093_v36 }
 0x756   : > { %1150 = vrot.lane.b32.xlu0 %v2537_v20, %s2372_s23 }
 0x75a   : > { %1209 = vrot.lane.b32.xlu0 %v2534_v17, %s2374_s26 }
 0x7c9   : > { %v1092_v37 = vpop.xlane.xlu0 %1091 }
 0x7ca   : > { %2250 = vrcp.f32 %v1092_v37 }
 0x7cd   : > { %v1095_v38 = vpop.xlane.xlu0 %1094 }
 0x7ce   : > { %2252 = vrcp.f32 %v1095_v38 }
 0x7d1   : > { %v1151_v39 = vpop.permute.xlu0 %1150 }
 0x7d2   : > { %v1156_v40 = vsel %vm653_vm4, %v1151_v39, 0 }
 0x7d3   : > { %2102 = vmatpush3.bf16.msra.mxu0 %v1156_v40  ;;  %v2222_v40 = vld [vmem:[%s2495_s10] sm:$0xff]  }
 0x7d4   : > { %v2251_v41 = vpop.eup %2250  ;;  %2113 = vmatprep.subr.bf16.mxu0 %v2363_v3 }
 0x7d5   : > { %v1098_v43 = vmul.f32 %v2251_v41, %v2247_v33  ;;  %v1210_v51 = vpop.permute.xlu0 %1209  ;;  %v2223_v41 = vld [vmem:[%s2495_s10 + $0x8] sm:$0xff]  }
 0x7d7   : > { %v1100_v44 = vpack.c.bf16 %v1098_v43, %v1098_v43 }
 0x7d8   : > { %v2253_v45 = vpop.eup %2252 }
 0x7d9   : > { %v1099_v47 = vmul.f32 %v2253_v45, %v2249_v35  ;;  %2098 = vmatmul.mubr.msk.bf16.vlgmr.msra.gmra.mrb[20].mxu1 %vm528_vm3, %v1100_v44 }
 0x7da   : > { %2108 = vmatpush3.bf16.xpose.msra.mxu1 %v1217_v46  ;;  %2109 = vmatprep.mubr.msk.bf16.mxu1 %vm2364_vm1, %v2363_v3 }
 0x7db   : > { %v1101_v49 = vpack.c.bf16 %v1099_v47, %v1099_v47  ;;  %2119 = vmatprep.subr.bf16.mxu1 %v2363_v3 }
 0x7dd   : > { %2104 = vmatmul.mubr.msk.bf16.vlgmr.msra.gmra.mrb[24].mxu0 %vm528_vm3, %v1101_v49 }
 0x7de   : > { %2114 = vmatpush3.bf16.xpose.msra.mxu0 %v1267_v50  ;;  %2115 = vmatprep.mubr.msk.bf16.mxu0 %vm2364_vm1, %v2363_v3 }
 0x7df   : > { %2125 = vmatprep.subr.bf16.mxu0 %v2363_v3 }
 0x7e1   : > { %2110 = vmatmul.mubr.msk.bf16.vlgmr.msra.gmra.mrb[24].mxu1 %vm528_vm3, %v1210_v51 }
 0x7e2   : > { %2121 = vmatprep.mubr.msk.bf16.mxu1 %vm2364_vm1, %v2363_v3 }
 0x7e5   : > { %2116 = vmatmul.mubr.msk.bf16.vlgmr.msra.gmra.mrb[28].mxu0 %vm528_vm3, %v1260_v52 }
 0x7e6   : > { %2127 = vmatprep.mubr.msk.bf16.mxu0 %vm2364_vm1, %v2363_v3 }
 0x8ac   : > { %v1144_v53 = vpop.f32.mrb[20].mxu1 }
 0x8ad   : > { %v2099_v54 = vpop.f32.mrb[21].mxu1 }
 0x8ae   : > { %v1147_v55 = vpop.f32.mrb[22].mxu1 }
 0x8af   : > { %v2100_v56 = vpop.f32.mrb[23].mxu1  ;;  %v1449_v55 = vsub.s32 1, %v2528_v9 }
 0x8b0   : > { %v1192_v57 = vpop.f32.mrb[24].mxu0 }
 0x8b1   : > { %v2105_v58 = vpop.f32.mrb[25].mxu0  ;;  %v1450_v56 = vrot.slane %v2531_v11, %v1449_v55 }
 0x8b2   : > { %v1195_v59 = vpop.f32.mrb[26].mxu0 }
 0x8b3   : > { %v2106_v61 = vpop.f32.mrb[27].mxu0 }
 0x8b4   : > { %v1253_v62 = vpop.f32.mrb[24].mxu1 }
 0x8b5   : > { %v1254_v63 = vadd.f32 %v2555_v25, %v1253_v62  ;;  %v2111_v1 = vpop.f32.mrb[25].mxu1 }
 0x8b6   : > { %v1256_v2 = vpop.f32.mrb[26].mxu1 }
 0x8b7   : > { %v2112_v4 = vpop.f32.mrb[27].mxu1  ;;  %v1309_v7 = vsel %vm528_vm3, %v1254_v63, -inf }
 0x8b8   : > { %v1303_v8 = vpop.f32.mrb[28].mxu0  ;;  %1310 = vmax.xlane.f32.xlu0 %v1309_v7 }
 0x8b9   : > { %v1304_v10 = vadd.f32 %v2561_v30, %v1303_v8  ;;  %v2117_v12 = vpop.f32.mrb[29].mxu0 }
 0x8ba   : > { %v1306_v13 = vpop.f32.mrb[30].mxu0 }
 0x8bb   : > { %v2118_v14 = vpop.f32.mrb[31].mxu0  ;;  %v1312_v15 = vsel %vm528_vm3, %v1304_v10, -inf }
 0x8bc   : > { %1313 = vmax.xlane.f32.xlu1 %v1312_v15 }
 0x8cd   : > { %1333 = vrot.lane.b32.xlu1 %v2534_v17, %s2375_s14 }
 0x8d1   : > { %969 = vrot.lane.b32.xlu1 %v2628_v60, %s2376_s30 }
 0x8d5   : > { %971 = vrot.lane.b32.xlu1 %v2630_v0, %s2376_s30 }
 0x8d9   : > { %1202 = vrot.lane.b32.xlu1 %v1192_v57, %s2377_s12 }
 0x945   : > { %v1311_v25 = vpop.xlane.xlu0 %1310 }
 0x946   : > { %v1315_v30 = vsub.f32 %v1254_v63, %v1311_v25 }
 0x948   : > { %v1317_v16 = vmul.f32 1.442695, %v1315_v30 }
 0x949   : > { %v1314_v18 = vpop.xlane.xlu1 %1313 }
 0x94a   : > { %2254 = vpow2.f32 %v1317_v16  ;;  %v1316_v19 = vsub.f32 %v1304_v10, %v1314_v18  ;;  %v2224_v16 = vld [vmem:[%s2500_s11] sm:$0xff]   ;;  %v2225_v18 = vld [vmem:[%s2500_s11 + $0x8] sm:$0xff]  }
 0x94c   : > { %v1319_v21 = vmul.f32 1.442695, %v1316_v19  ;;  %v2226_v19 = vld [vmem:[%s2505_s24] sm:$0xff]  }
 0x94d   : > { %v1334_v22 = vpop.permute.xlu1 %1333 }
 0x94e   : > { %2256 = vpow2.f32 %v1319_v21  ;;  %v1339_v17 = vsel %vm653_vm4, %v1334_v22, 0  ;;  %v2227_v21 = vld [vmem:[%s2505_s24 + $0x8] sm:$0xff]  }
 0x94f   : > { %2120 = vmatpush3.bf16.msra.mxu1 %v1339_v17 }
 0x950   : > { %2131 = vmatprep.subr.bf16.mxu1 %v2363_v3 }
 0x951   : > { %v970_v60 = vpop.permute.xlu1 %969 }
 0x952   : > { %976 = vst.msk [vmem:[#allocation3] sm:$0xff] %vm975_vm5, %v970_v60 }
 0x954   : > { %v2255_v0 = vpop.eup %2254 }
 0x955   : > { %v972_v23 = vpop.permute.xlu1 %971  ;;  %v1321_v24 = vsel %vm528_vm3, %v2255_v0, 0.0 }
 0x956   : > { %977 = vst.msk [vmem:[#allocation3 + $0x8] sm:$0xff] %vm975_vm5, %v972_v23  ;;  %1322 = vadd.xlane.f32.xlu0 %v1321_v24 }
 0x958   : > { %v2257_v26 = vpop.eup %2256 }
 0x959   : > { %v1203_v27 = vpop.permute.xlu1 %1202  ;;  %v1324_v28 = vsel %vm528_vm3, %v2257_v26, 0.0 }
 0x95a   : > { %1208 = vst.msk [vmem:[#allocation3 + $0x8] sm:$0xff] %vm1206_vm6, %v1203_v27  ;;  %1325 = vadd.xlane.f32.xlu0 %v1324_v28 }
 0x970   : > { %1381 = vrot.lane.b32.xlu0 %v2537_v20, %s2375_s14 }
 0x974   : > { %1200 = vrot.lane.b32.xlu0 %v1144_v53, %s2377_s12 }
 0x9e3   : > { %v1323_v29 = vpop.xlane.xlu0 %1322 }
 0x9e4   : > { %2258 = vrcp.f32 %v1323_v29 }
 0x9e7   : > { %v1326_v31 = vpop.xlane.xlu0 %1325 }
 0x9e8   : > { %2260 = vrcp.f32 %v1326_v31  ;;  %v1544_v31 = vsub.s32 3, %v2528_v9 }
 0x9eb   : > { %v1382_v32 = vpop.permute.xlu0 %1381 }
 0x9ec   : > { %v1387_v33 = vsel %vm653_vm4, %v1382_v32, 0 }
 0x9ed   : > { %2126 = vmatpush3.bf16.msra.mxu0 %v1387_v33 }
 0x9ee   : > { %v2259_v34 = vpop.eup %2258  ;;  %2139 = vmatprep.subr.bf16.mxu0 %v2363_v3 }
 0x9ef   : > { %v1329_v35 = vmul.f32 %v2259_v34, %v2255_v0  ;;  %v1201_v36 = vpop.permute.xlu0 %1200 }
 0x9f0   : > { %1207 = vst.msk [vmem:[#allocation3] sm:$0xff] %vm1206_vm6, %v1201_v36 }
 0x9f1   : > { %v1331_v37 = vpack.c.bf16 %v1329_v35, %v1329_v35  ;;  %v1545_v35 = vrot.slane %v2531_v11, %v1544_v31 }
 0x9f2   : > { %v2261_v20 = vpop.eup %2260 }
 0x9f3   : > { %v1330_v38 = vmul.f32 %v2261_v20, %v2257_v26  ;;  %2122 = vmatmul.mubr.msk.bf16.vlgmr.msra.gmra.mrb[28].mxu1 %vm528_vm3, %v1331_v37  ;;  %v1538_v26 = vsub.s32 2, %v2528_v9 }
 0x9f4   : > { %2135 = vmatprep.mubr.msk.bf16.mxu1 %vm2364_vm1, %v2363_v3  ;;  %2132 = vmatpush3.bf16.msra.mxu1 %v2222_v40  ;;  %v2229_v40 = vld [vmem:[%s2505_s24 + $0x18] sm:$0xff]  }
 0x9f5   : > { %v1332_v39 = vpack.c.bf16 %v1330_v38, %v1330_v38  ;;  %2133 = vmatprep.subr.bf16.mxu1 %v2363_v3  ;;  %v1539_v28 = vrot.slane %v2531_v11, %v1538_v26 }
 0x9f7   : > { %2128 = vmatmul.mubr.msk.bf16.vlgmr.msra.gmra.mrb[32].mxu0 %vm528_vm3, %v1332_v39  ;;  %v2228_v39 = vld [vmem:[%s2505_s24 + $0x10] sm:$0xff]  }
 0x9f8   : > { %2143 = vmatprep.mubr.msk.bf16.mxu0 %vm2364_vm1, %v2363_v3  ;;  %2134 = vmatpush3.bf16.msra.mxu1 %v2223_v41  ;;  %v1555_v41 = vsub.s32 4, %v2528_v9 }
 0x9f9   : > { %2147 = vmatprep.subr.bf16.mxu1 %v2363_v3  ;;  %2140 = vmatpush3.bf16.msra.mxu0 %v2224_v16 }
 0x9fa   : > { %2141 = vmatprep.subr.bf16.mxu0 %v2363_v3 }
 0x9fd   : > { %2142 = vmatpush3.bf16.msra.mxu0 %v2225_v18 }
 0xac6   : > { %v1375_v42 = vpop.f32.mrb[28].mxu1 }
 0xac7   : > { %1431 = vrot.lane.b32.xlu0 %v1375_v42, %s2378_s15  ;;  %v2123_v43 = vpop.f32.mrb[29].mxu1  ;;  %v1556_v42 = vrot.slane %v2531_v11, %v1555_v41 }
 0xac8   : > { %v1378_v44 = vpop.f32.mrb[30].mxu1 }
 0xac9   : > { %v2124_v45 = vpop.f32.mrb[31].mxu1 }
 0xaca   : > { %v1423_v46 = vpop.f32.mrb[32].mxu0 }
 0xacb   : > { %1433 = vrot.lane.b32.xlu1 %v1423_v46, %s2378_s15  ;;  %v2129_v47 = vpop.f32.mrb[33].mxu0 }
 0xacc   : > { %v1426_v48 = vpop.f32.mrb[34].mxu0 }
 0xacd   : > { %v2130_v49 = vpop.f32.mrb[35].mxu0 }
 0xb39   : > { %v1432_v50 = vpop.permute.xlu0 %1431 }
 0xb3a   : > { %1438 = vst.msk [vmem:[#allocation3] sm:$0xff] %vm1437_vm7, %v1432_v50 }
 0xb3d   : > { %v1434_v51 = vpop.permute.xlu1 %1433 }
 0xb3e   : > { %1439 = vst.msk [vmem:[#allocation3 + $0x8] sm:$0xff] %vm1437_vm7, %v1434_v51 }
 0xb41   : > { %v1440_v52 = vld [vmem:[#allocation3] sm:$0xff] }
 0xb45   : > { %v1441_v53 = vld [vmem:[#allocation3 + $0x8] sm:$0xff] }
 0xb46   : > { %v1446_v54 = vpack.c.bf16 %v1441_v53, %v1440_v52  ;;  %v1626_v52 = vsub.s32 5, %v2528_v9 }
 0xb48   : > { %2136 = vmatmul.mubr.msk.bf16.vlgmr.msra.gmra.mrb[32].mxu1 %vm464_vm2, %v1446_v54 }
 0xb49   : > { %2155 = vmatprep.mubr.msk.bf16.mxu1 %vm2364_vm1, %v2363_v3  ;;  %2148 = vmatpush3.bf16.msra.mxu1 %v2226_v19  ;;  %v1727_v19 = vsub.s32 6, %v2528_v9 }
 0xb4a   : > { %2149 = vmatprep.subr.bf16.mxu1 %v2363_v3 }
 0xb4d   : > { %2150 = vmatpush3.bf16.msra.mxu1 %v2227_v21  ;;  %v1733_v21 = vsub.s32 7, %v2528_v9 }
 0xb4e   : > { %2151 = vmatprep.subr.bf16.mxu1 %v2363_v3 }
 0xb51   : > { %2152 = vmatpush3.bf16.msra.mxu1 %v2228_v39 }
 0xb52   : > { %2153 = vmatprep.subr.bf16.mxu1 %v2363_v3  ;;  %v1627_v3 = vrot.slane %v2531_v11, %v1626_v52 }
 0xb55   : > { %2154 = vmatpush3.bf16.msra.mxu1 %v2229_v40 }
 0xc1b   : > { %v1500_v57 = vpop.f32.mrb[32].mxu1 }
 0xc1c   : > { %v1501_v58 = vadd.f32 %v1500_v57, %v1450_v56  ;;  %v2137_v59 = vpop.f32.mrb[33].mxu1 }
 0xc1d   : > { %v1503_v61 = vpop.f32.mrb[34].mxu1 }
 0xc1e   : > { %v1504_v62 = vadd.f32 %v1503_v61, %v1450_v56  ;;  %v2138_v63 = vpop.f32.mrb[35].mxu1  ;;  %v1507_v1 = vadd.f32 %v1501_v58, %v2515_v5 }
 0xc20   : > { %v1509_v2 = vsel %vm464_vm2, %v1507_v1, 0.0  ;;  %v1508_v4 = vadd.f32 %v1504_v62, %v2517_v6 }
 0xc21   : > { %1510 = vadd.xlane.f32.xlu0 %v1509_v2 }
 0xc22   : > { %v1512_v7 = vsel %vm464_vm2, %v1508_v4, 0.0 }
 0xc23   : > { %1513 = vadd.xlane.f32.xlu1 %v1512_v7 }
 0xcae   : > { %v1511_v8 = vpop.xlane.xlu0 %1510 }
 0xcaf   : > { %v1516_v10 = vmul.f32 0.03125, %v1511_v8 }
 0xcb0   : > { %v1514_v12 = vpop.xlane.xlu1 %1513 }
 0xcb1   : > { %v1518_v13 = vsub.f32 %v1507_v1, %v1516_v10  ;;  %v1517_v14 = vmul.f32 0.03125, %v1514_v12 }
 0xcb3   : > { %v1519_v15 = vsub.f32 %v1508_v4, %v1517_v14  ;;  %v1520_v25 = vmul.f32 %v1518_v13, %v1518_v13 }
 0xcb5   : > { %v1522_v5 = vsel %vm464_vm2, %v1520_v25, 0.0  ;;  %v1521_v30 = vmul.f32 %v1519_v15, %v1519_v15 }
 0xcb6   : > { %1523 = vadd.xlane.f32.xlu0 %v1522_v5 }
 0xcb7   : > { %v1525_v6 = vsel %vm464_vm2, %v1521_v30, 0.0 }
 0xcba   : > { %1526 = vadd.xlane.f32.xlu0 %v1525_v6 }
 0xd43   : > { %v1524_v22 = vpop.xlane.xlu0 %1523 }
 0xd44   : > { %v1528_v17 = vmul.f32 0.03125, %v1524_v22  ;;  %v1728_v22 = vrot.slane %v2531_v11, %v1727_v19 }
 0xd46   : > { %v1530_v60 = vadd.f32 1e-05, %v1528_v17 }
 0xd47   : > { %v1527_v0 = vpop.xlane.xlu0 %1526 }
 0xd48   : > { %2262 = vrsqrt.f32 %v1530_v60  ;;  %v1529_v23 = vmul.f32 0.03125, %v1527_v0  ;;  %v1734_v60 = vrot.slane %v2531_v11, %v1733_v21 }
 0xd4a   : > { %v1531_v24 = vadd.f32 1e-05, %v1529_v23 }
 0xd4c   : > { %2264 = vrsqrt.f32 %v1531_v24 }
 0xd52   : > { %v2263_v27 = vpop.eup %2262 }
 0xd53   : > { %v1534_v29 = vmul.f32 %v2263_v27, %v1518_v13 }
 0xd55   : > { %v1540_v33 = vmul.f32 %v1539_v28, %v1534_v29 }
 0xd56   : > { %v2265_v32 = vpop.eup %2264 }
 0xd57   : > { %v1535_v34 = vmul.f32 %v2265_v32, %v1519_v15  ;;  %v1546_v37 = vadd.f32 %v1545_v35, %v1540_v33 }
 0xd59   : > { %v1541_v36 = vmul.f32 %v1539_v28, %v1535_v34 }
 0xd5b   : > { %v1547_v20 = vadd.f32 %v1545_v35, %v1541_v36 }
 0xd5d   : > { %v1552_v38 = vpack.c.bf16 %v1547_v20, %v1546_v37 }
 0xd5f   : > { %2144 = vmatmul.mubr.msk.bf16.vlgmr.msra.gmra.mrb[36].mxu0 %vm464_vm2, %v1552_v38 }
 0xe32   : > { %v1606_v43 = vpop.f32.mrb[36].mxu0 }
 0xe33   : > { %v1607_v44 = vadd.f32 %v1606_v43, %v1556_v42  ;;  %v2145_v45 = vpop.f32.mrb[37].mxu0 }
 0xe34   : > { %v1609_v46 = vpop.f32.mrb[38].mxu0 }
 0xe35   : > { %v1610_v47 = vadd.f32 %v1609_v46, %v1556_v42  ;;  %v2146_v48 = vpop.f32.mrb[39].mxu0  ;;  %v1613_v49 = vmax.f32 %v1607_v44, 0.0 }
 0xe37   : > { %v1614_v50 = vmax.f32 %v1610_v47, 0.0  ;;  %v1971_v47 = vld [vmem:[%s2792_s7] ss:$0 sm:$0xff] (!%p1970_p6) }
 0xe39   : > { %v1623_v51 = vpack.c.bf16 %v1614_v50, %v1613_v49  ;;  %v1972_v49 = vld [vmem:[%s2792_s7 + $0x1] ss:$0 sm:$0xff] (!%p1970_p6) }
 0xe3b   : > { %2156 = vmatmul.mubr.msk.bf16.vlgmr.msra.gmra.mrb[36].mxu1 %vm1652_vm8, %v1623_v51 }
 0xf0e   : > { %v1690_v53 = vpop.f32.mrb[36].mxu1 }
 0xf0f   : > { %v1691_v54 = vadd.f32 %v1690_v53, %v1627_v3  ;;  %v2157_v55 = vpop.f32.mrb[37].mxu1 }
 0xf10   : > { %v1693_v56 = vpop.f32.mrb[38].mxu1 }
 0xf11   : > { %v1694_v57 = vadd.f32 %v1693_v56, %v1627_v3  ;;  %v2158_v58 = vpop.f32.mrb[39].mxu1  ;;  %v1697_v59 = vadd.f32 %v1691_v54, %v1546_v37 }
 0xf13   : > { %v1699_v61 = vsel %vm464_vm2, %v1697_v59, 0.0  ;;  %v1698_v62 = vadd.f32 %v1694_v57, %v1547_v20 }
 0xf14   : > { %1700 = vadd.xlane.f32.xlu1 %v1699_v61 }
 0xf15   : > { %v1702_v63 = vsel %vm464_vm2, %v1698_v62, 0.0 }
 0xf16   : > { %1703 = vadd.xlane.f32.xlu0 %v1702_v63 }
 0xfa1   : > { %v1701_v1 = vpop.xlane.xlu1 %1700 }
 0xfa2   : > { %v1705_v2 = vmul.f32 0.03125, %v1701_v1 }
 0xfa3   : > { %v1704_v4 = vpop.xlane.xlu0 %1703 }
 0xfa4   : > { %v1707_v7 = vsub.f32 %v1697_v59, %v1705_v2  ;;  %v1706_v8 = vmul.f32 0.03125, %v1704_v4 }
 0xfa6   : > { %v1708_v10 = vsub.f32 %v1698_v62, %v1706_v8  ;;  %v1709_v12 = vmul.f32 %v1707_v7, %v1707_v7 }
 0xfa8   : > { %v1711_v13 = vsel %vm464_vm2, %v1709_v12, 0.0  ;;  %v1710_v14 = vmul.f32 %v1708_v10, %v1708_v10 }
 0xfa9   : > { %1712 = vadd.xlane.f32.xlu1 %v1711_v13 }
 0xfaa   : > { %v1714_v15 = vsel %vm464_vm2, %v1710_v14, 0.0 }
 0xfab   : > { %1715 = vadd.xlane.f32.xlu0 %v1714_v15 }
0x1036   : > { %v1713_v25 = vpop.xlane.xlu1 %1712 }
0x1037   : > { %v1717_v5 = vmul.f32 0.03125, %v1713_v25 }
0x1038   : > { %v1716_v30 = vpop.xlane.xlu0 %1715 }
0x1039   : > { %v1719_v6 = vadd.f32 1e-05, %v1717_v5  ;;  %v1718_v16 = vmul.f32 0.03125, %v1716_v30 }
0x103b   : > { %2266 = vrsqrt.f32 %v1719_v6  ;;  %v1720_v18 = vadd.f32 1e-05, %v1718_v16 }
0x103d   : > { %2268 = vrsqrt.f32 %v1720_v18 }
0x1045   : > { %v2267_v17 = vpop.eup %2266 }
0x1046   : > { %v1723_v0 = vmul.f32 %v2267_v17, %v1707_v7 }
0x1047   : > { %v2269_v23 = vpop.eup %2268 }
0x1048   : > { %v1729_v24 = vmul.f32 %v1728_v22, %v1723_v0  ;;  %v1724_v26 = vmul.f32 %v2269_v23, %v1708_v10  ;;  %1742 = sbr.rel (%p1970_p6) target bundleno = 4490 (0x118a), region = 64 }
0x104a   : > { %v1735_v27 = vadd.f32 %v1734_v60, %v1729_v24  ;;  %v1730_v28 = vmul.f32 %v1728_v22, %v1724_v26 }
0x104c   : > { %1737 = vst.msk [vmem:[#allocation2] sm:$0xff] %vm464_vm2, %v1735_v27  ;;  %v1736_v29 = vadd.f32 %v1734_v60, %v1730_v28  ;;  %v1745_v9 = vsel (!%p1970_p6), %vm464_vm2, %v1735_v27, 0.0 }
0x104d   : > { %1746 = vadd.xlane.f32.xlu0 (!%p1970_p6), %v1745_v9 }
0x104e   : > { %1738 = vst.msk [vmem:[#allocation2 + $0x8] sm:$0xff] %vm464_vm2, %v1736_v29  ;;  %v1748_v31 = vsel (!%p1970_p6), %vm464_vm2, %v1736_v29, 0.0 }
0x1051   : > { %1749 = vadd.xlane.f32.xlu0 %v1748_v31 }
0x10da   : > { %v1747_v11 = vpop.xlane.xlu0 %1746 }
0x10db   : > { %v1751_v32 = vmul.f32 0.03125, %v1747_v11 }
0x10dd   : > { %v1753_v33 = vsub.f32 %v1735_v27, %v1751_v32 }
0x10de   : > { %v1750_v34 = vpop.xlane.xlu0 %1749 }
0x10df   : > { %v1752_v35 = vmul.f32 0.03125, %v1750_v34  ;;  %v1755_v36 = vmul.f32 %v1753_v33, %v1753_v33 }
0x10e1   : > { %v1754_v37 = vsub.f32 %v1736_v29, %v1752_v35  ;;  %v1757_v20 = vsel %vm464_vm2, %v1755_v36, 0.0 }
0x10e2   : > { %1758 = vadd.xlane.f32.xlu1 %v1757_v20 }
0x10e3   : > { %v1756_v38 = vmul.f32 %v1754_v37, %v1754_v37 }
0x10e5   : > { %v1760_v39 = vsel %vm464_vm2, %v1756_v38, 0.0 }
0x10e6   : > { %1761 = vadd.xlane.f32.xlu1 %v1760_v39 }
0x116f   : > { %v1759_v40 = vpop.xlane.xlu1 %1758 }
0x1170   : > { %v1763_v41 = vmul.f32 0.03125, %v1759_v40 }
0x1172   : > { %v1765_v42 = vadd.f32 1e-05, %v1763_v41 }
0x1173   : > { %v1762_v43 = vpop.xlane.xlu1 %1761 }
0x1174   : > { %2270 = vrsqrt.f32 %v1765_v42  ;;  %v1764_v44 = vmul.f32 0.03125, %v1762_v43 }
0x1176   : > { %v1766_v45 = vadd.f32 1e-05, %v1764_v44 }
0x1178   : > { %2272 = vrsqrt.f32 %v1766_v45 }
0x117e   : > { %v2271_v46 = vpop.eup %2270 }
0x117f   : > { %v1769_v48 = vmul.f32 %v2271_v46, %v1753_v33 }
0x1181   : > { %v1775_v50 = vmul.f32 %v1971_v47, %v1769_v48 }
0x1182   : > { %v2273_v51 = vpop.eup %2272 }
0x1183   : > { %v1781_v52 = vadd.f32 %v1972_v49, %v1775_v50  ;;  %v1770_v3 = vmul.f32 %v2273_v51, %v1754_v37 }
0x1185   : > { %1783 = vst.msk [vmem:[#allocation7] sm:$0xff] %vm464_vm2, %v1781_v52  ;;  %v1776_v53 = vmul.f32 %v1971_v47, %v1770_v3 }
0x1187   : > { %v1782_v54 = vadd.f32 %v1972_v49, %v1776_v53 }
0x1189   : > { %1784 = vst.msk [vmem:[#allocation7 + $0x8] sm:$0xff] %vm464_vm2, %v1782_v54 }
0x118a PF: > { %s2803_s16 = sadd.s32 4294967295, %s2358_s29   ;;  %s2379_s18 = smov [#allocation7]  }
0x118b   : > { %p2749_p8 = scmp.eq.s32.totalorder %s2803_s16, 1  ;;  %s1794_s13 = sshll.u32 %s2379_s18, 4  ;;  %s1795_s13 = int_to_ptr.vmem [resolvable:$true] %s1794_s13 }
0x118c   : > { %s2302_s19 = scalar_lea.vmem %s1795_s13, 256  ;;  %p2309_p13 = scmp.lt.s32.totalorder %s1795_s13, %s1795_s13 }
0x118d   : > { %p2303_p10 = scmp.ne.s32.totalorder %s1795_s13, %s2302_s19  ;;  %p2310_p0 = scmp.lt.s32.totalorder %s2302_s19, %s2302_s19 }
0x118f   : > { %p2304_p11 = pnand %p2303_p10, %p2749_p8  ;;  %p2311_p1 = por %p2310_p0, %p2309_p13 }
0x1191   : > { %p2305_p12 = pneg %p2304_p11 }
0x1193   : > { %p2312_p2 = pnand %p2311_p1, %p2305_p12 }
0x1195   : > { %2315 = shalt.err (!%p2312_p2)
}
0x1196   : > { %s2316_s22 = scalar_lea.hbm %s2793_s8, 256 }
0x1197   : > { %p2317_p5 = scmp.ne.s32.totalorder %s2793_s8, %s2316_s22  ;;  %p2322_p3 = scmp.lt.u32.totalorder %s2316_s22, %s2793_s8 }
0x1199   : > { %p2318_p7 = pnand %p2317_p5, %p2749_p8 }
0x119b   : > { %p2319_p9 = pneg %p2318_p7 }
0x119d   : > { %p2324_p4 = pnand %p2322_p3, %p2319_p9 }
0x119f   : > { %2327 = shalt.err (!%p2324_p4)
}
0x11a0   : > { %s2380_s12 = smov 128  }
0x11a1   : > { %2164 = dma.vmem_to_hbm [thread:$0]  (%p2749_p8), %s1795_s13, 256, %s2793_s8, [#allocation6], %s2380_s12, %s2380_s12, %s2376_s30  }
0x11a2   : > { %2345 = dma.done.wait (%p2749_p8), [#allocation6], 256  }
0x11a3   : > { %2347 = vsyncadd (%p2749_p8), [#allocation6], 4294967040 }
0x11a4 PF: > { %s20_s29 = sadd.s32 1, %s2358_s29   ;;  %s2805_s27 = smov %s2354_s28 }
0x11a5   : > { %p17_p6 = scmp.ge.s32.totalorder %s20_s29, 4   ;;  %s2806_s28 = smov %s2808_s9 }
0x11a7   :  { %19 = sbr.rel (!%p17_p6) target bundleno = 3 (0x3), region = 109 }
0x11ae   :  { %1810 = vsyncpa [#allocation5], 1 }
0x11af   :  { %1812 = vsyncpa [#allocation5 + $0x1], 1 }
0x11b0   :  { %1813 = vsyncpa [#allocation6], 1 }
0x11b1   :  { %1815 = vsyncpa [#allocation6 + $0x1], 1 }

</bundles_post_ra>
